<compile_context>
chip_gen: v6e
topology: v6e:2x2x1
jax: 0.10.0
libtpu: 0.0.40
codegen_flags: <defaults>
</compile_context>

<pallas_src>
import functools

import jax
import jax.numpy as jnp
from jax.experimental import pallas as pl
from jax.experimental.pallas import tpu as pltpu

_VMEM_LIMIT = 48 * 1024 * 1024        # safe on v5e/v6e (128 MiB) and v7x (64 MiB)
_RESIDENT_Z_BYTES = 8 * 1024 * 1024   # single-copy budget for a VMEM-resident Z


def _round_up(x, m):
    return ((x + m - 1) // m) * m


# ---------------------------------------------------------------------------
# Aggregation kernel:
#   acc += (A+I)[row tile, col tile] @ Z[col tile]        (bf16 MXU, f32 acc)
#   finalize: h = dinv_rows * acc + b ; optional Softplus ;
#             optional fused  out = dinv_rows * (h @ W_next)   (layer 1)
#             otherwise       out = h                          (layer 2)
#   grid axis 0: output row tiles  (parallel  -> megacore / v7x 2-TC split)
#   grid axis 1: Â column tiles    (arbitrary -> reduction, VMEM accumulator)
# ---------------------------------------------------------------------------
def _aggregate_kernel(adj_ref, z_ref, dinv_ref, b_ref, w_ref, out_ref, acc_ref,
                      *, tk, softplus, fuse_w, z_resident):
    k = pl.program_id(1)

    @pl.when(k == 0)
    def _():
        acc_ref[...] = jnp.zeros_like(acc_ref)

    if z_resident:
        # Z is fully VMEM-resident; slice out the rows matching this Â column tile.
        z = z_ref[pl.ds(pl.multiple_of(k * tk, tk), tk), :]
    else:
        z = z_ref[...]

    acc_ref[...] += jnp.dot(
        adj_ref[...].astype(jnp.bfloat16), z,
        preferred_element_type=jnp.float32,
    )

    @pl.when(k == pl.num_programs(1) - 1)
    def _():
        dinv = dinv_ref[...]                       # (tm, 1) f32
        h = dinv * acc_ref[...] + b_ref[...]       # Â Z + b  (rows post-scaled)
        if softplus:
            h = jnp.maximum(h, 0.0) + jnp.log1p(jnp.exp(-jnp.abs(h)))
        if fuse_w:
            # Next layer's feature transform + its dinv pre-scaling, fused here.
            z_next = jnp.dot(h.astype(jnp.bfloat16), w_ref[...],
                             preferred_element_type=jnp.float32)
            out_ref[...] = (dinv * z_next).astype(out_ref.dtype)
        else:
            out_ref[...] = h.astype(out_ref.dtype)


def _aggregate(adj, z, dinv, bias, w_next, *, tm, tk, softplus, fuse_w,
               z_resident, out_dtype):
    n_pad = adj.shape[0]
    h = z.shape[1]

    if z_resident:
        z_spec = pl.BlockSpec((n_pad, h), lambda i, k: (0, 0))   # read once
    else:
        z_spec = pl.BlockSpec((tk, h), lambda i, k: (k, 0))      # streamed

    kernel = functools.partial(_aggregate_kernel, tk=tk, softplus=softplus,
                               fuse_w=fuse_w, z_resident=z_resident)
    return pl.pallas_call(
        kernel,
        out_shape=jax.ShapeDtypeStruct((n_pad, h), out_dtype),
        grid_spec=pltpu.PrefetchScalarGridSpec(
            num_scalar_prefetch=0,
            grid=(n_pad // tm, n_pad // tk),
            in_specs=[
                pl.BlockSpec((tm, tk), lambda i, k: (i, k)),   # (A+I) int8 tile
                z_spec,                                        # Z slab
                pl.BlockSpec((tm, 1), lambda i, k: (i, 0)),    # dinv rows
                pl.BlockSpec((1, h), lambda i, k: (0, 0)),     # bias
                pl.BlockSpec((h, h), lambda i, k: (0, 0)),     # W_next (fused)
            ],
            out_specs=pl.BlockSpec((tm, h), lambda i, k: (i, 0)),
            scratch_shapes=[pltpu.VMEM((tm, h), jnp.float32)],
        ),
        compiler_params=pltpu.CompilerParams(
            dimension_semantics=("parallel", "arbitrary"),
            vmem_limit_bytes=_VMEM_LIMIT,
        ),
    )(adj, z, dinv, bias, w_next)


# ---------------------------------------------------------------------------
# Forward pass wrapper
# ---------------------------------------------------------------------------
def gcn_body_forward(x, edge_index, w1, b1, w2, b2):
    """x: (N, nfeat) f32, edge_index: (2, E) int32 with rows (src, dst)."""
    n = x.shape[0]
    nhid = w1.shape[1]
    hpad = _round_up(nhid, 128)                 # lane-dense hidden width

    # ---- tile-size selection ----------------------------------------------
    n_pad = _round_up(n, 256)
    tm = 256
    for cand in (1024, 512):                    # big tiles, but keep >=2 row
        if n_pad % cand == 0 and n_pad // cand >= 2:   # tiles for v7x 2-TC split
            tm = cand
            break
    tk = 256
    for cand in (2048, 1024, 512):
        if n_pad % cand == 0:
            tk = cand
            break
    z_resident = n_pad * hpad * 2 <= _RESIDENT_Z_BYTES   # bf16 bytes, single copy

    # ---- glue: binary (A+I) in int8 (padded, built once) + D^-1/2 ----------
    src = edge_index[0].astype(jnp.int32)
    dst = edge_index[1].astype(jnp.int32)
    ids = jnp.arange(n, dtype=jnp.int32)
    rows = jnp.concatenate([dst, ids])
    cols = jnp.concatenate([src, ids])
    adj = jnp.zeros((n_pad, n_pad), jnp.int8).at[rows, cols].add(1)  # A[i,j]: j->i, +I
    deg = 1.0 + jnp.zeros((n,), jnp.float32).at[dst].add(1.0)        # row sums of A+I
    dinv = 1.0 / jnp.sqrt(deg)
    dinv_pad = jnp.pad(dinv, (0, n_pad - n)).reshape(n_pad, 1).astype(jnp.float32)

    # ---- layer-1 feature transform in plain XLA (tiny K, not worth a kernel)
    z1 = (x.astype(jnp.float32) @ w1.astype(jnp.float32)) * dinv[:, None]
    z1 = jnp.pad(z1, ((0, n_pad - n), (0, hpad - nhid))).astype(jnp.bfloat16)

    b1_p = jnp.pad(b1, (0, hpad - nhid)).reshape(1, hpad).astype(jnp.float32)
    b2_p = jnp.pad(b2, (0, hpad - nhid)).reshape(1, hpad).astype(jnp.float32)
    w2_p = jnp.pad(w2, ((0, hpad - nhid), (0, hpad - nhid))).astype(jnp.bfloat16)

    # ---- layer 1 (+ fused h @ W2): z2 = dinv * (softplus(Â X W1 + b1) @ W2) --
    z2 = _aggregate(adj, z1, dinv_pad, b1_p, w2_p, tm=tm, tk=tk,
                    softplus=True, fuse_w=True, z_resident=z_resident,
                    out_dtype=jnp.bfloat16)

    # TODO(synk): Dropout omitted (eval-mode forward; identity).

    # ---- layer 2: out = Â (h @ W2) + b2 -------------------------------------
    out = _aggregate(adj, z2, dinv_pad, b2_p, w2_p, tm=tm, tk=tk,
                     softplus=False, fuse_w=False, z_resident=z_resident,
                     out_dtype=jnp.float32)

    return out[:n, :nhid]


if __name__ == "__main__":
    # Small deterministic example: N=16 nodes, nfeat=8, nhid=32.
    N, NFEAT, NHID = 16, 8, 32
    key = jax.random.PRNGKey(0)
    kx, ke, kw1, kw2 = jax.random.split(key, 4)

    x = jax.random.normal(kx, (N, NFEAT), dtype=jnp.float32)

    # Random undirected edges (duplicate both directions).
    e = jax.random.randint(ke, (2, 24), 0, N, dtype=jnp.int32)
    edge_index = jnp.concatenate([e, e[::-1]], axis=1)

    # Deterministic parameter init (Glorot-like); GCNConv weight is (in, out).
    w1 = jax.random.normal(kw1, (NFEAT, NHID), dtype=jnp.float32) * (
        1.0 / jnp.sqrt(NFEAT)
    )
    b1 = jnp.zeros((NHID,), jnp.float32)
    w2 = jax.random.normal(kw2, (NHID, NHID), dtype=jnp.float32) * (
        1.0 / jnp.sqrt(NHID)
    )
    b2 = jnp.zeros((NHID,), jnp.float32)

    out = gcn_body_forward(x, edge_index, w1, b1, w2, b2)
    jax.block_until_ready(out)
    assert out.shape == (N, NHID) and out.dtype == jnp.float32
    assert bool(jnp.all(jnp.isfinite(out)))
    print("KERNEL_OK")
</pallas_src>

<mosaic_0001>
module attributes {stable_mosaic.version = 11 : i64} {
  func.func @_aggregate_kernel(%arg0: i32, %arg1: i32, %arg2: memref<256x256xi8, #tpu.memory_space<vmem>>, %arg3: memref<256x128xbf16, #tpu.memory_space<vmem>>, %arg4: memref<256x1xf32, #tpu.memory_space<vmem>>, %arg5: memref<1x128xf32, #tpu.memory_space<vmem>>, %arg6: memref<128x128xbf16, #tpu.memory_space<vmem>>, %arg7: memref<256x128xbf16, #tpu.memory_space<vmem>>, %arg8: memref<256x128xf32, #tpu.memory_space<vmem>>) attributes {dimension_semantics = [#tpu.dimension_semantics<parallel>, #tpu.dimension_semantics<arbitrary>], iteration_bounds = array<i64: 1, 1>, scalar_prefetch = 0 : i64, scratch_operands = 1 : i64, tpu.core_type = #tpu.core_type<tc>, window_params = [{transform_indices = @transform_0, window_bounds = array<i64: 256, 256>}, {pipeline_mode = #tpu.pipeline_mode<synchronous>, transform_indices = @transform_1, window_bounds = array<i64: 256, 128>}, {transform_indices = @transform_2, window_bounds = array<i64: 256, 1>}, {pipeline_mode = #tpu.pipeline_mode<synchronous>, transform_indices = @transform_3, window_bounds = array<i64: 1, 128>}, {pipeline_mode = #tpu.pipeline_mode<synchronous>, transform_indices = @transform_4, window_bounds = array<i64: 128, 128>}, {transform_indices = @transform_5, window_bounds = array<i64: 256, 128>}]} {
    %c0_i32 = arith.constant 0 : i32
    %0 = arith.cmpi eq, %arg1, %c0_i32 : i32
    %1 = arith.extui %0 : i1 to i32
    %c0_i32_0 = arith.constant 0 : i32
    %2 = arith.cmpi ne, %1, %c0_i32_0 : i32
    scf.if %2 {
      %cst_9 = arith.constant 0.000000e+00 : f32
      %16 = vector.broadcast %cst_9 : f32 to vector<256x128xf32>
      %c0_10 = arith.constant 0 : index
      %c0_11 = arith.constant 0 : index
      %17 = vector.load %arg8[%c0_10, %c0_11] : memref<256x128xf32, #tpu.memory_space<vmem>>, vector<256x128xf32>
      tpu.vector_store %arg8[%c0_10, %c0_11], %16 {strides = array<i32>} : memref<256x128xf32, #tpu.memory_space<vmem>>, vector<256x128xf32>,
    } else {
    }
    %c256_i32 = arith.constant 256 : i32
    %3 = arith.muli %arg1, %c256_i32 : i32
    %4 = tpu.assume_multiple %3, 256 : i32
    %5 = arith.index_cast %4 : i32 to index
    %c0 = arith.constant 0 : index
    %6 = vector.load %arg3[%5, %c0] : memref<256x128xbf16, #tpu.memory_space<vmem>>, vector<256x128xbf16>
    %c0_1 = arith.constant 0 : index
    %c0_2 = arith.constant 0 : index
    %7 = vector.load %arg8[%c0_1, %c0_2] : memref<256x128xf32, #tpu.memory_space<vmem>>, vector<256x128xf32>
    %c0_3 = arith.constant 0 : index
    %c0_4 = arith.constant 0 : index
    %8 = vector.load %arg2[%c0_3, %c0_4] : memref<256x256xi8, #tpu.memory_space<vmem>>, vector<256x256xi8>
    %9 = arith.sitofp %8 : vector<256x256xi8> to vector<256x256xbf16>
    %cst = arith.constant dense<0.000000e+00> : vector<256x128xf32>
    %10 = tpu.matmul %9, %6, %cst {dimension_numbers = #tpu.dot_dimension_numbers<[1], [0], [0], [1], [0, 0, 1, 1], [], []>} : vector<256x256xbf16>, vector<256x128xbf16>, vector<256x128xf32> -> vector<256x128xf32>
    %11 = arith.addf %7, %10 : vector<256x128xf32>
    %c0_5 = arith.constant 0 : index
    %c0_6 = arith.constant 0 : index
    %12 = vector.load %arg8[%c0_5, %c0_6] : memref<256x128xf32, #tpu.memory_space<vmem>>, vector<256x128xf32>
    tpu.vector_store %arg8[%c0_5, %c0_6], %11 {strides = array<i32>} : memref<256x128xf32, #tpu.memory_space<vmem>>, vector<256x128xf32>,
    %c0_i32_7 = arith.constant 0 : i32
    %13 = arith.cmpi eq, %arg1, %c0_i32_7 : i32
    %14 = arith.extui %13 : i1 to i32
    %c0_i32_8 = arith.constant 0 : i32
    %15 = arith.cmpi ne, %14, %c0_i32_8 : i32
    scf.if %15 {
      %c0_9 = arith.constant 0 : index
      %c0_10 = arith.constant 0 : index
      %16 = vector.load %arg4[%c0_9, %c0_10] : memref<256x1xf32, #tpu.memory_space<vmem>>, vector<256x1xf32>
      %c0_11 = arith.constant 0 : index
      %c0_12 = arith.constant 0 : index
      %17 = vector.load %arg8[%c0_11, %c0_12] : memref<256x128xf32, #tpu.memory_space<vmem>>, vector<256x128xf32>
      %18 = vector.broadcast %16 : vector<256x1xf32> to vector<256x128xf32>
      %19 = arith.mulf %18, %17 : vector<256x128xf32>
      %c0_13 = arith.constant 0 : index
      %c0_14 = arith.constant 0 : index
      %20 = vector.load %arg5[%c0_13, %c0_14] : memref<1x128xf32, #tpu.memory_space<vmem>>, vector<1x128xf32>
      %21 = vector.broadcast %20 : vector<1x128xf32> to vector<256x128xf32>
      %22 = arith.addf %19, %21 : vector<256x128xf32>
      %cst_15 = arith.constant 0.000000e+00 : f32
      %23 = vector.broadcast %cst_15 : f32 to vector<256x128xf32>
      %24 = arith.maximumf %22, %23 : vector<256x128xf32>
      %25 = math.absf %22 : vector<256x128xf32>
      %cst_16 = arith.constant 0.000000e+00 : f32
      %26 = vector.broadcast %cst_16 : f32 to vector<256x128xf32>
      %27 = arith.subf %26, %25 : vector<256x128xf32>
      %28 = math.exp %27 : vector<256x128xf32>
      %29 = math.log1p %28 : vector<256x128xf32>
      %30 = arith.addf %24, %29 : vector<256x128xf32>
      %31 = arith.truncf %30 : vector<256x128xf32> to vector<256x128xbf16>
      %c0_17 = arith.constant 0 : index
      %c0_18 = arith.constant 0 : index
      %32 = vector.load %arg6[%c0_17, %c0_18] : memref<128x128xbf16, #tpu.memory_space<vmem>>, vector<128x128xbf16>
      %cst_19 = arith.constant dense<0.000000e+00> : vector<256x128xf32>
      %33 = tpu.matmul %31, %32, %cst_19 {dimension_numbers = #tpu.dot_dimension_numbers<[1], [0], [0], [1], [0, 0, 1, 1], [], []>} : vector<256x128xbf16>, vector<128x128xbf16>, vector<256x128xf32> -> vector<256x128xf32>
      %34 = vector.broadcast %16 : vector<256x1xf32> to vector<256x128xf32>
      %35 = arith.mulf %34, %33 : vector<256x128xf32>
      %36 = arith.truncf %35 : vector<256x128xf32> to vector<256x128xbf16>
      %c0_20 = arith.constant 0 : index
      %c0_21 = arith.constant 0 : index
      %37 = vector.load %arg7[%c0_20, %c0_21] : memref<256x128xbf16, #tpu.memory_space<vmem>>, vector<256x128xbf16>
      tpu.vector_store %arg7[%c0_20, %c0_21], %36 {strides = array<i32>} : memref<256x128xbf16, #tpu.memory_space<vmem>>, vector<256x128xbf16>,
    } else {
    }
    return
  }
  func.func @transform_0(%arg0: i32, %arg1: i32) -> (i32, i32) {
    %c0_i32 = arith.constant 0 : i32
    return %arg0, %arg1 : i32, i32
  }
  func.func @transform_1(%arg0: i32, %arg1: i32) -> (i32, i32) {
    %c0_i32 = arith.constant 0 : i32
    %c0_i32_0 = arith.constant 0 : i32
    %c0_i32_1 = arith.constant 0 : i32
    return %c0_i32, %c0_i32_0 : i32, i32
  }
  func.func @transform_2(%arg0: i32, %arg1: i32) -> (i32, i32) {
    %c0_i32 = arith.constant 0 : i32
    %c0_i32_0 = arith.constant 0 : i32
    return %arg0, %c0_i32 : i32, i32
  }
  func.func @transform_3(%arg0: i32, %arg1: i32) -> (i32, i32) {
    %c0_i32 = arith.constant 0 : i32
    %c0_i32_0 = arith.constant 0 : i32
    %c0_i32_1 = arith.constant 0 : i32
    return %c0_i32, %c0_i32_0 : i32, i32
  }
  func.func @transform_4(%arg0: i32, %arg1: i32) -> (i32, i32) {
    %c0_i32 = arith.constant 0 : i32
    %c0_i32_0 = arith.constant 0 : i32
    %c0_i32_1 = arith.constant 0 : i32
    return %c0_i32, %c0_i32_0 : i32, i32
  }
  func.func @transform_5(%arg0: i32, %arg1: i32) -> (i32, i32) {
    %c0_i32 = arith.constant 0 : i32
    %c0_i32_0 = arith.constant 0 : i32
    return %arg0, %c0_i32 : i32, i32
  }
}

</mosaic_0001>

<bundles_post_ra>
// kernel: tpu_custom_call.1
= control target key start
LH: loop header
LB: loop body
LE: loop exit
PB: predicated region body
PF: predicated region fallthrough
CT: control target
= control target key end

     0   :  { %10 = vsyncpa [#allocation4], 0  ;;  %s3272_s0 = inlined_call_operand.vmem [shape: s8[256,256], index: 0, kind: input, shape index: {}]   ;;  %s3273_s1 = inlined_call_operand.vmem [shape: bf16[256,128], index: 1, kind: input, shape index: {}]   ;;  %s3274_s2 = inlined_call_operand.vmem [shape: f32[256,1], index: 2, kind: input, shape index: {}]   ;;  %s3275_s3 = inlined_call_operand.vmem [shape: f32[1,128], index: 3, kind: input, shape index: {}]   ;;  %s3276_s4 = inlined_call_operand.hbm [shape: bf16[128,128], index: 4, kind: input, shape index: {}]   ;;  %s3277_s5 = inlined_call_operand.hbm [shape: bf16[256,128], index: 5, kind: output, shape index: {}]  }
   0x1   :  { %11 = vsyncpa [#allocation5], 0  ;;  %s2327_s18 = smov [#allocation3]  }
   0x2   :  { %s25_s19 = sshll.u32 %s2327_s18, 4  ;;  %s26_s19 = int_to_ptr.vmem [resolvable:$true] %s25_s19 }
   0x3   :  { %s2291_s20 = scalar_lea.vmem %s26_s19, 1024  ;;  %p2296_p1 = scmp.lt.s32.totalorder %s26_s19, %s26_s19 }
   0x4   :  { %p2292_p0 = scmp.ne.s32.totalorder %s26_s19, %s2291_s20  ;;  %p2297_p2 = scmp.lt.s32.totalorder %s2291_s20, %s2291_s20 }
   0x6   :  { %p2298_p3 = por %p2297_p2, %p2296_p1 }
   0x8   :  { %p2299_p4 = pnand %p2298_p3, %p2292_p0 }
   0xa   :  { %2302 = shalt.err (!%p2299_p4)
}
   0xb   :  { %s2328_s21 = smov 64   ;;  %s2329_s22 = smov 4  }
   0xc   :  { %31 = dma.hbm_to_vmem [thread:$0]  %s3276_s4, 1024, %s26_s19, [#allocation4], %s2328_s21, %s2328_s21, %s2329_s22  }
   0xd   :  { %2323 = dma.done.wait [#allocation4], 1024  }
   0xe   :  { %2324 = vsyncadd [#allocation4], 4294966272  ;;  %v2330_v0 = vmov 0   ;;  %v2131_v1 = vld [vmem:[%s3273_s1 + $0x78] sm:$0xff]   ;;  %v2133_v3 = vld [vmem:[%s3273_s1 + $0x70] sm:$0xff]  }
   0xf   :  { %2129 = vset.pattern.permute.xlu0 %v2330_v0  ;;  %2130 = vset.pattern.permute.xlu1 %v2330_v0  ;;  %v2132_v2 = vld [vmem:[%s3273_s1 + $0x38] sm:$0xff]   ;;  %v2134_v4 = vld [vmem:[%s3273_s1 + $0x30] sm:$0xff]   ;;  %v2135_v5 = vld [vmem:[%s3273_s1 + $0x68] sm:$0xff]  }
  0x10   :  { %1924 = vmatprep.subr.bf16.mxu0 %v2131_v1  ;;  %2108 = vmatprep.subr.bf16.mxu1 %v2131_v1  ;;  %v2136_v6 = vld [vmem:[%s3273_s1 + $0x28] sm:$0xff]   ;;  %v2137_v7 = vld [vmem:[%s3273_s1 + $0x60] sm:$0xff]   ;;  %v2139_v9 = vld [vmem:[%s3273_s1 + $0x58] sm:$0xff]  }
  0x11   :  { %1925 = vmatpush3.bf16.msra.mxu0 %v2132_v2  ;;  %2116 = vmatpush3.bf16.msra.mxu1 %v2132_v2  ;;  %v2138_v8 = vld [vmem:[%s3273_s1 + $0x20] sm:$0xff]   ;;  %v2140_v10 = vld [vmem:[%s3273_s1 + $0x18] sm:$0xff]   ;;  %v2141_v11 = vld [vmem:[%s3273_s1 + $0x50] sm:$0xff]  }
  0x12   :  { %1926 = vmatprep.subr.bf16.mxu0 %v2133_v3  ;;  %2109 = vmatprep.subr.bf16.mxu1 %v2133_v3  ;;  %v142_v12 = vld [vmem:[%s3272_s0 + $0x8] sm:$0xff]  ;;  %v2142_v16 = vld [vmem:[%s3273_s1 + $0x10] sm:$0xff]   ;;  %v513_v17 = vld [vmem:[%s3274_s2] sm:$0xff] }
  0x13   :  { %v154_v13 = vld [vmem:[%s3272_s0 + $0x68] sm:$0xff]  ;;  %v158_v14 = vunpack.c.l.s8.bf16 %v142_v12  ;;  %v515_v18 = vld [vmem:[%s3274_s2 + $0x10] sm:$0xff]  ;;  %579 = vperm.xlu0 %2129, %v513_v17   ;;  %v516_v22 = vld [vmem:[%s3274_s2 + $0x18] sm:$0xff]  ;;  %v160_v31 = vunpack.c.h.s8.bf16 %v142_v12 }
  0x14   :  { %v182_v15 = vunpack.c.l.s8.bf16 %v154_v13  ;;  %v2143_v19 = vld [vmem:[%s3273_s1 + $0x48] sm:$0xff]   ;;  %589 = vperm.xlu1 %2130, %v515_v18   ;;  %v2145_v23 = vld [vmem:[%s3273_s1 + $0x40] sm:$0xff]   ;;  %v184_v32 = vunpack.c.h.s8.bf16 %v154_v13  ;;  %v519_v33 = vld [vmem:[%s3274_s2 + $0x30] sm:$0xff] }
  0x15   :  { %1927 = vmatpush3.bf16.msra.mxu0 %v2134_v4  ;;  %2117 = vmatpush3.bf16.msra.mxu1 %v2134_v4  ;;  %v2144_v20 = vld [vmem:[%s3273_s1 + $0x8] sm:$0xff]   ;;  %v2146_v24 = vld [vmem:[%s3273_s1] sm:$0xff]   ;;  %v520_v34 = vld [vmem:[%s3274_s2 + $0x38] sm:$0xff] }
  0x16   :  { %1928 = vmatprep.subr.bf16.mxu0 %v2135_v5  ;;  %2110 = vmatprep.subr.bf16.mxu1 %v2135_v5  ;;  %v514_v21 = vld [vmem:[%s3274_s2 + $0x8] sm:$0xff]  ;;  %v141_v25 = vld [vmem:[%s3272_s0] sm:$0xff]  ;;  %v144_v35 = vld [vmem:[%s3272_s0 + $0x18] sm:$0xff] }
  0x17   :  { %317 = vmatprep.mubr.bf16.mxu0 %v158_v14  ;;  %413 = vmatprep.mubr.bf16.mxu1 %v182_v15  ;;  %v153_v26 = vld [vmem:[%s3272_s0 + $0x60] sm:$0xff]  ;;  %v518_v28 = vld [vmem:[%s3274_s2 + $0x28] sm:$0xff]  ;;  %v157_v29 = vunpack.c.l.s8.bf16 %v141_v25  ;;  %v156_v36 = vld [vmem:[%s3272_s0 + $0x78] sm:$0xff]  ;;  %v159_v39 = vunpack.c.h.s8.bf16 %v141_v25  ;;  %v162_v41 = vunpack.c.l.s8.bf16 %v144_v35  ;;  %v164_v51 = vunpack.c.h.s8.bf16 %v144_v35 }
  0x18   :  { %584 = vperm.xlu0 %2129, %v514_v21   ;;  %594 = vperm.xlu1 %2130, %v516_v22   ;;  %v517_v27 = vld [vmem:[%s3274_s2 + $0x20] sm:$0xff]  ;;  %v181_v30 = vunpack.c.l.s8.bf16 %v153_v26  ;;  %v522_v38 = vld [vmem:[%s3274_s2 + $0x48] sm:$0xff]  ;;  %v183_v40 = vunpack.c.h.s8.bf16 %v153_v26  ;;  %v186_v42 = vunpack.c.l.s8.bf16 %v156_v36  ;;  %v523_v43 = vld [vmem:[%s3274_s2 + $0x50] sm:$0xff]  ;;  %v188_v52 = vunpack.c.h.s8.bf16 %v156_v36 }
  0x19   :  { %1929 = vmatpush3.bf16.msra.mxu0 %v2136_v6  ;;  %2118 = vmatpush3.bf16.msra.mxu1 %v2136_v6  ;;  %v521_v37 = vld [vmem:[%s3274_s2 + $0x40] sm:$0xff]  ;;  %v524_v44 = vld [vmem:[%s3274_s2 + $0x58] sm:$0xff]  ;;  %v143_v45 = vld [vmem:[%s3272_s0 + $0x10] sm:$0xff] }
  0x1a   :  { %1930 = vmatprep.subr.bf16.mxu0 %v2137_v7  ;;  %2111 = vmatprep.subr.bf16.mxu1 %v2137_v7  ;;  %v155_v46 = vld [vmem:[%s3272_s0 + $0x70] sm:$0xff]  ;;  %v525_v47 = vld [vmem:[%s3274_s2 + $0x60] sm:$0xff]  ;;  %v526_v48 = vld [vmem:[%s3274_s2 + $0x68] sm:$0xff]  ;;  %v161_v49 = vunpack.c.l.s8.bf16 %v143_v45  ;;  %v163_v58 = vunpack.c.h.s8.bf16 %v143_v45 }
  0x1b   :  { %v185_v50 = vunpack.c.l.s8.bf16 %v155_v46  ;;  %v527_v53 = vld [vmem:[%s3274_s2 + $0x70] sm:$0xff]  ;;  %v528_v54 = vld [vmem:[%s3274_s2 + $0x78] sm:$0xff]  ;;  %v146_v55 = vld [vmem:[%s3272_s0 + $0x28] sm:$0xff]  ;;  %v187_v59 = vunpack.c.h.s8.bf16 %v155_v46 }
  0x1c   :  { %599 = vperm.xlu0 %2129, %v517_v27   ;;  %604 = vperm.xlu1 %2130, %v518_v28   ;;  %v529_v56 = vld [vmem:[%s3274_s2 + $0x80] sm:$0xff]  ;;  %v530_v57 = vld [vmem:[%s3274_s2 + $0x88] sm:$0xff]  ;;  %v166_v60 = vunpack.c.l.s8.bf16 %v146_v55  ;;  %v531_v61 = vld [vmem:[%s3274_s2 + $0x90] sm:$0xff]  ;;  %v168_v3 = vunpack.c.h.s8.bf16 %v146_v55 }
  0x1d   :  { %1931 = vmatpush3.bf16.msra.mxu0 %v2138_v8  ;;  %2119 = vmatpush3.bf16.msra.mxu1 %v2138_v8  ;;  %v532_v62 = vld [vmem:[%s3274_s2 + $0x98] sm:$0xff]  ;;  %v145_v63 = vld [vmem:[%s3272_s0 + $0x20] sm:$0xff]  ;;  %v534_v1 = vld [vmem:[%s3274_s2 + $0xa8] sm:$0xff] }
  0x1e   :  { %1932 = vmatprep.subr.bf16.mxu0 %v2139_v9  ;;  %2112 = vmatprep.subr.bf16.mxu1 %v2139_v9  ;;  %v533_v0 = vld [vmem:[%s3274_s2 + $0xa0] sm:$0xff]  ;;  %v165_v2 = vunpack.c.l.s8.bf16 %v145_v63  ;;  %v535_v4 = vld [vmem:[%s3274_s2 + $0xb0] sm:$0xff]  ;;  %v536_v5 = vld [vmem:[%s3274_s2 + $0xb8] sm:$0xff]  ;;  %v167_v9 = vunpack.c.h.s8.bf16 %v145_v63 }
  0x1f   :  { %v148_v6 = vld [vmem:[%s3272_s0 + $0x38] sm:$0xff]  ;;  %v537_v7 = vld [vmem:[%s3274_s2 + $0xc0] sm:$0xff]  ;;  %v538_v8 = vld [vmem:[%s3274_s2 + $0xc8] sm:$0xff] }
  0x20   :  { %609 = vperm.xlu0 %2129, %v519_v33   ;;  %614 = vperm.xlu1 %2130, %v520_v34   ;;  %v540_v12 = vld [vmem:[%s3274_s2 + $0xd8] sm:$0xff]  ;;  %v147_v13 = vld [vmem:[%s3272_s0 + $0x30] sm:$0xff]  ;;  %v541_v14 = vld [vmem:[%s3274_s2 + $0xe0] sm:$0xff]  ;;  %v172_v17 = vunpack.c.h.s8.bf16 %v148_v6 }
  0x21   :  { %1933 = vmatpush3.bf16.msra.mxu0 %v2140_v10  ;;  %2120 = vmatpush3.bf16.msra.mxu1 %v2140_v10  ;;  %v170_v10 = vunpack.c.l.s8.bf16 %v148_v6  ;;  %v542_v15 = vld [vmem:[%s3274_s2 + $0xe8] sm:$0xff]  ;;  %v543_v18 = vld [vmem:[%s3274_s2 + $0xf0] sm:$0xff]  ;;  %v171_v21 = vunpack.c.h.s8.bf16 %v147_v13  ;;  %v152_v26 = vld [vmem:[%s3272_s0 + $0x58] sm:$0xff] }
  0x22   :  { %1934 = vmatprep.subr.bf16.mxu0 %v2141_v11  ;;  %2113 = vmatprep.subr.bf16.mxu1 %v2141_v11  ;;  %v539_v11 = vld [vmem:[%s3274_s2 + $0xd0] sm:$0xff]  ;;  %v178_v28 = vunpack.c.l.s8.bf16 %v152_v26  ;;  %v2147_v33 = vld [vmem:[#allocation3 + $0x38] sm:$0xff]   ;;  %v2149_v35 = vld [vmem:[#allocation3 + $0x28] sm:$0xff]  }
  0x23   :  { %v2148_v34 = vld [vmem:[#allocation3 + $0x30] sm:$0xff]   ;;  %v2150_v36 = vld [vmem:[#allocation3 + $0x20] sm:$0xff]  }
  0x24   :  { %619 = vperm.xlu0 %2129, %v521_v37   ;;  %624 = vperm.xlu1 %2130, %v522_v38   ;;  %v2151_v37 = vld [vmem:[#allocation3 + $0x18] sm:$0xff]   ;;  %v2152_v38 = vld [vmem:[#allocation3 + $0x10] sm:$0xff]  }
  0x25   :  { %1935 = vmatpush3.bf16.msra.mxu0 %v2142_v16  ;;  %2121 = vmatpush3.bf16.msra.mxu1 %v2142_v16  ;;  %v169_v16 = vunpack.c.l.s8.bf16 %v147_v13 }
  0x26   :  { %1936 = vmatprep.subr.bf16.mxu0 %v2143_v19  ;;  %2114 = vmatprep.subr.bf16.mxu1 %v2143_v19  ;;  %v544_v19 = vld [vmem:[%s3274_s2 + $0xf8] sm:$0xff] }
  0x28   :  { %629 = vperm.xlu0 %2129, %v523_v43   ;;  %634 = vperm.xlu1 %2130, %v524_v44   ;;  %v2154_v44 = vld [vmem:[#allocation3] sm:$0xff]  }
  0x29   :  { %1937 = vmatpush3.bf16.msra.mxu0 %v2144_v20  ;;  %2122 = vmatpush3.bf16.msra.mxu1 %v2144_v20  ;;  %v150_v20 = vld [vmem:[%s3272_s0 + $0x48] sm:$0xff] }
  0x2a   :  { %1938 = vmatprep.subr.bf16.mxu0 %v2145_v23  ;;  %2115 = vmatprep.subr.bf16.mxu1 %v2145_v23  ;;  %v174_v22 = vunpack.c.l.s8.bf16 %v150_v20  ;;  %v149_v23 = vld [vmem:[%s3272_s0 + $0x40] sm:$0xff]  ;;  %v176_v25 = vunpack.c.h.s8.bf16 %v150_v20 }
  0x2b   :  { %v175_v27 = vunpack.c.h.s8.bf16 %v149_v23 }
  0x2c   :  { %639 = vperm.xlu0 %2129, %v525_v47   ;;  %644 = vperm.xlu1 %2130, %v526_v48  }
  0x2d   :  { %1939 = vmatpush3.bf16.msra.mxu0 %v2146_v24  ;;  %2123 = vmatpush3.bf16.msra.mxu1 %v2146_v24  ;;  %v173_v24 = vunpack.c.l.s8.bf16 %v149_v23 }
  0x2e   :  { %2060 = vmatprep.subr.bf16.mxu1 %v2147_v33 }
  0x30   :  { %318 = vmatmul.mubr.bf16.vlgmr.msra.gmra.mxu0 %v157_v29  ;;  %414 = vmatmul.mubr.bf16.vlgmr.msra.gmra.mxu1 %v181_v30  ;;  %v151_v29 = vld [vmem:[%s3272_s0 + $0x50] sm:$0xff] }
  0x31   :  { %325 = vmatprep.mubr.bf16.mxu0 %v160_v31  ;;  %421 = vmatprep.mubr.bf16.mxu1 %v184_v32  ;;  %v177_v30 = vunpack.c.l.s8.bf16 %v151_v29  ;;  %v180_v31 = vunpack.c.h.s8.bf16 %v152_v26  ;;  %v179_v32 = vunpack.c.h.s8.bf16 %v151_v29 }
  0x32   :  { %649 = vperm.xlu0 %2129, %v527_v53   ;;  %654 = vperm.xlu1 %2130, %v528_v54  }
  0x33   :  { %2061 = vmatpush3.bf16.msra.mxu1 %v2147_v33 }
  0x34   :  { %2062 = vmatprep.subr.bf16.mxu1 %v2148_v34 }
  0x36   :  { %659 = vperm.xlu0 %2129, %v529_v56   ;;  %664 = vperm.xlu1 %2130, %v530_v57  }
  0x37   :  { %2063 = vmatpush3.bf16.msra.mxu1 %v2148_v34 }
  0x38   :  { %326 = vmatmul.mubr.bf16.gmra.mxu0 %v159_v39  ;;  %422 = vmatmul.mubr.bf16.gmra.mxu1 %v183_v40  ;;  %v2153_v39 = vld [vmem:[#allocation3 + $0x8] sm:$0xff]  }
  0x39   :  { %333 = vmatprep.mubr.bf16.mxu0 %v162_v41  ;;  %429 = vmatprep.mubr.bf16.mxu1 %v186_v42 }
  0x3a   :  { %669 = vperm.xlu0 %2129, %v531_v61   ;;  %674 = vperm.xlu1 %2130, %v532_v62  }
  0x3b   :  { %2064 = vmatprep.subr.bf16.mxu1 %v2149_v35 }
  0x3c   :  { %2065 = vmatpush3.bf16.msra.mxu1 %v2149_v35 }
  0x3d   :  { %2066 = vmatprep.subr.bf16.mxu1 %v2150_v36 }
  0x3e   :  { %679 = vperm.xlu0 %2129, %v533_v0   ;;  %684 = vperm.xlu1 %2130, %v534_v1  }
  0x40   :  { %334 = vmatmul.mubr.bf16.gmra.mxu0 %v161_v49  ;;  %430 = vmatmul.mubr.bf16.gmra.mxu1 %v185_v50 }
  0x41   :  { %341 = vmatprep.mubr.bf16.mxu0 %v164_v51  ;;  %437 = vmatprep.mubr.bf16.mxu1 %v188_v52 }
  0x42   :  { %689 = vperm.xlu0 %2129, %v535_v4   ;;  %694 = vperm.xlu1 %2130, %v536_v5  }
  0x43   :  { %2067 = vmatpush3.bf16.msra.mxu1 %v2150_v36 }
  0x44   :  { %2068 = vmatprep.subr.bf16.mxu1 %v2151_v37 }
  0x46   :  { %699 = vperm.xlu0 %2129, %v537_v7   ;;  %704 = vperm.xlu1 %2130, %v538_v8  }
  0x47   :  { %2069 = vmatpush3.bf16.msra.mxu1 %v2151_v37 }
  0x48   :  { %342 = vmatmul.mubr.bf16.gmra.mxu0 %v163_v58  ;;  %438 = vmatmul.mubr.bf16.gmra.mxu1 %v187_v59 }
  0x49   :  { %349 = vmatprep.mubr.bf16.mxu0 %v166_v60  ;;  %2070 = vmatprep.subr.bf16.mxu1 %v2152_v38 }
  0x4a   :  { %709 = vperm.xlu0 %2129, %v539_v11   ;;  %714 = vperm.xlu1 %2130, %v540_v12  }
  0x4b   :  { %2071 = vmatpush3.bf16.msra.mxu1 %v2152_v38 }
  0x4c   :  { %2072 = vmatprep.subr.bf16.mxu1 %v2153_v39 }
  0x4e   :  { %719 = vperm.xlu0 %2129, %v541_v14   ;;  %724 = vperm.xlu1 %2130, %v542_v15  }
  0x4f   :  { %2073 = vmatpush3.bf16.msra.mxu1 %v2153_v39 }
  0x50   :  { %350 = vmatmul.mubr.bf16.gmra.mxu0 %v165_v2  ;;  %2074 = vmatprep.subr.bf16.mxu1 %v2154_v44 }
  0x51   :  { %357 = vmatprep.mubr.bf16.mxu0 %v168_v3 }
  0x52   :  { %729 = vperm.xlu0 %2129, %v543_v18   ;;  %734 = vperm.xlu1 %2130, %v544_v19  }
  0x53   :  { %2075 = vmatpush3.bf16.msra.mxu1 %v2154_v44 }
  0x58   :  { %358 = vmatmul.mubr.bf16.gmra.mxu0 %v167_v9  ;;  %v2612_v9 = vld [vmem:[%s3275_s3] ss:$0 sm:$0xff]  ;;  %s2331_s3 = smov [#allocation6]  }
  0x59   :  { %365 = vmatprep.mubr.bf16.mxu0 %v170_v10  ;;  %s1726_s29 = sshll.u32 %s2331_s3, 4  ;;  %s1727_s29 = int_to_ptr.vmem [resolvable:$true] %s1726_s29 }
  0x5a   :  { %s2303_s30 = scalar_lea.vmem %s1727_s29, 2048  ;;  %p2308_p6 = scmp.lt.s32.totalorder %s1727_s29, %s1727_s29 }
  0x5b   :  { %p2304_p5 = scmp.ne.s32.totalorder %s1727_s29, %s2303_s30  ;;  %p2309_p7 = scmp.lt.s32.totalorder %s2303_s30, %s2303_s30 }
  0x5d   :  { %p2310_p8 = por %p2309_p7, %p2308_p6 }
  0x5f   :  { %p2311_p9 = pnand %p2310_p8, %p2304_p5 }
  0x60   :  { %366 = vmatmul.mubr.bf16.gmra.mxu0 %v169_v16 }
  0x61   :  { %373 = vmatprep.mubr.bf16.mxu0 %v172_v17 }
  0x68   :  { %374 = vmatmul.mubr.bf16.gmra.mxu0 %v171_v21 }
  0x69   :  { %381 = vmatprep.mubr.bf16.mxu0 %v174_v22 }
  0x70   :  { %382 = vmatmul.mubr.bf16.gmra.mxu0 %v173_v24 }
  0x71   :  { %389 = vmatprep.mubr.bf16.mxu0 %v176_v25 }
  0x78   :  { %390 = vmatmul.mubr.bf16.gmra.mxu0 %v175_v27 }
  0x79   :  { %397 = vmatprep.mubr.bf16.mxu0 %v178_v28 }
  0x80   :  { %398 = vmatmul.mubr.bf16.gmra.mxu0 %v177_v30 }
  0x81   :  { %405 = vmatprep.mubr.bf16.mxu0 %v180_v31 }
  0x88   :  { %406 = vmatmul.mubr.bf16.gmra.mxu0 %v179_v32 }
  0x8e   :  { %v2560_v40 = vpop.permute.xlu0 %579 }
  0x8f   :  { %3309 = vst [vmem:[#allocation9_spill] sm:$0xff] %v2560_v40  ;;  %v2562_v41 = vpop.permute.xlu1 %589 }
  0x90   :  { %3310 = vst [vmem:[#allocation10_spill] sm:$0xff] %v2562_v41 }
  0x93   :  { %v2564_v42 = vpop.permute.xlu0 %584  ;;  %v2566_v43 = vpop.permute.xlu1 %594 }
  0x94   :  { %3311 = vst [vmem:[#allocation11_spill] sm:$0xff] %v2564_v42  ;;  %3312 = vst [vmem:[#allocation12_spill] sm:$0xff] %v2566_v43 }
  0x97   :  { %v2568_v45 = vpop.permute.xlu0 %599  ;;  %v2570_v46 = vpop.permute.xlu1 %604 }
  0x98   :  { %3313 = vst [vmem:[#allocation13_spill] sm:$0xff] %v2568_v45  ;;  %3314 = vst [vmem:[#allocation14_spill] sm:$0xff] %v2570_v46 }
  0x9b   :  { %v2572_v47 = vpop.permute.xlu0 %609  ;;  %v2574_v48 = vpop.permute.xlu1 %614 }
  0x9c   :  { %3315 = vst [vmem:[#allocation15_spill] sm:$0xff] %v2572_v47  ;;  %3316 = vst [vmem:[#allocation16_spill] sm:$0xff] %v2574_v48 }
  0x9f   :  { %v2576_v49 = vpop.permute.xlu0 %619  ;;  %v2578_v50 = vpop.permute.xlu1 %624 }
  0xa0   :  { %3317 = vst [vmem:[#allocation17_spill] sm:$0xff] %v2576_v49  ;;  %3318 = vst [vmem:[#allocation18_spill] sm:$0xff] %v2578_v50 }
  0xa3   :  { %v2580_v51 = vpop.permute.xlu0 %629  ;;  %v2582_v52 = vpop.permute.xlu1 %634 }
  0xa4   :  { %3319 = vst [vmem:[#allocation19_spill] sm:$0xff] %v2580_v51  ;;  %3320 = vst [vmem:[#allocation20_spill] sm:$0xff] %v2582_v52 }
  0xa7   :  { %v2584_v53 = vpop.permute.xlu0 %639  ;;  %v2586_v54 = vpop.permute.xlu1 %644 }
  0xa8   :  { %3321 = vst [vmem:[#allocation21_spill] sm:$0xff] %v2584_v53  ;;  %3322 = vst [vmem:[#allocation22_spill] sm:$0xff] %v2586_v54 }
  0xad   :  { %v2588_v55 = vpop.permute.xlu0 %649  ;;  %v2590_v56 = vpop.permute.xlu1 %654 }
  0xb1   :  { %v2592_v57 = vpop.permute.xlu0 %659  ;;  %v2594_v58 = vpop.permute.xlu1 %664 }
  0xb5   :  { %v2596_v59 = vpop.permute.xlu0 %669  ;;  %v2598_v60 = vpop.permute.xlu1 %674 }
  0xb9   :  { %v2600_v61 = vpop.permute.xlu0 %679  ;;  %v2602_v62 = vpop.permute.xlu1 %684 }
  0xba   :  { %3323 = vst [vmem:[#allocation23_spill] sm:$0xff] %v2602_v62 }
  0xbd   :  { %v2604_v1 = vpop.permute.xlu0 %689  ;;  %v2606_v5 = vpop.permute.xlu1 %694 }
  0xc1   :  { %v2614_v13 = vpop.permute.xlu0 %699  ;;  %v2619_v18 = vpop.permute.xlu1 %704 }
  0xc2   :  { %3324 = vst [vmem:[#allocation24_spill] sm:$0xff] %v2614_v13  ;;  %3325 = vst [vmem:[#allocation25_spill] sm:$0xff] %v2619_v18 }
  0xc5   :  { %v2625_v30 = vpop.permute.xlu0 %709  ;;  %v2634_v37 = vpop.permute.xlu1 %714 }
  0xc6   :  { %3326 = vst [vmem:[#allocation26_spill] sm:$0xff] %v2625_v30  ;;  %3327 = vst [vmem:[#allocation27_spill] sm:$0xff] %v2634_v37 }
  0xf0   :  { %v1940_v63 = vpop.f32.mrf.mxu0  ;;  %v2012_v0 = vpop.f32.mrf.mxu1 }
  0xf2   :  { %v1941_v2 = vpop.f32.mrf.mxu0  ;;  %v2013_v3 = vpop.f32.mrf.mxu1 }
  0xf3   :  { %v1942_v4 = vadd.f32 %v1941_v2, %v1940_v63  ;;  %v2014_v15 = vadd.f32 %v2013_v3, %v2012_v0 }
  0xf4   :  { %v1943_v6 = vpop.f32.mrf.mxu0  ;;  %v2015_v7 = vpop.f32.mrf.mxu1 }
  0xf5   :  { %v737_v8 = vmul.f32 %v1942_v4, %v2560_v40  ;;  %v761_v25 = vmul.f32 %v2014_v15, %v2614_v13 }
  0xf6   :  { %v1944_v10 = vpop.f32.mrf.mxu0  ;;  %v2016_v11 = vpop.f32.mrf.mxu1 }
  0xf7   :  { %v1945_v12 = vadd.f32 %v1944_v10, %v1943_v6  ;;  %v2617_v14 = vadd.f32 %v2612_v9, %v737_v8  ;;  %v2017_v20 = vadd.f32 %v2016_v11, %v2015_v7  ;;  %v2637_v39 = vadd.f32 %v2612_v9, %v761_v25 }
  0xf8   :  { %v1946_v16 = vpop.f32.mrf.mxu0  ;;  %v2018_v17 = vpop.f32.mrf.mxu1 }
  0xf9   :  { %v738_v19 = vmul.f32 %v1945_v12, %v2564_v42  ;;  %v840_v24 = vand.u32 2147483647, %v2617_v14  ;;  %v762_v32 = vmul.f32 %v2017_v20, %v2619_v18  ;;  %3328 = vst [vmem:[#allocation28_spill] sm:$0xff] %v2637_v39  ;;  %v864_v20 = vand.u32 2147483647, %v2637_v39 }
  0xfa   :  { %v1947_v21 = vpop.f32.mrf.mxu0  ;;  %v2019_v22 = vpop.f32.mrf.mxu1 }
  0xfb   :  { %v1948_v23 = vadd.f32 %v1947_v21, %v1946_v16  ;;  %v2020_v29 = vadd.f32 %v2019_v22, %v2018_v17  ;;  %v2628_v31 = vadd.f32 %v2612_v9, %v738_v19  ;;  %v872_v38 = vsub.f32 0.0, %v840_v24  ;;  %v2650_v17 = vpop.permute.xlu0 %719 }
  0xfc   :  { %v1949_v26 = vpop.f32.mrf.mxu0  ;;  %v2021_v27 = vpop.f32.mrf.mxu1  ;;  %v2644_v7 = vadd.f32 %v2612_v9, %v762_v32  ;;  %3330 = vst [vmem:[#allocation30_spill] sm:$0xff] %v2650_v17 }
  0xfd   :  { %v739_v28 = vmul.f32 %v1948_v23, %v2562_v41  ;;  %v763_v3 = vmul.f32 %v2020_v29, %v2625_v30  ;;  %v841_v6 = vand.u32 2147483647, %v2628_v31  ;;  %v904_v19 = vmul.f32 1.442695, %v872_v38 }
  0xfe   :  { %v1950_v33 = vpop.f32.mrf.mxu0  ;;  %v2022_v34 = vpop.f32.mrf.mxu1  ;;  %3329 = vst [vmem:[#allocation29_spill] sm:$0xff] %v2644_v7  ;;  %v865_v29 = vand.u32 2147483647, %v2644_v7 }
  0xff   :  { %v2632_v35 = vadd.f32 %v2612_v9, %v739_v28  ;;  %v1951_v36 = vadd.f32 %v1950_v33, %v1949_v26  ;;  %v2023_v44 = vadd.f32 %v2022_v34, %v2021_v27  ;;  %v2654_v25 = vadd.f32 %v2612_v9, %v763_v3 }
 0x100   :  { %v1952_v63 = vpop.f32.mrf.mxu0  ;;  %v2024_v0 = vpop.f32.mrf.mxu1  ;;  %v873_v28 = vsub.f32 0.0, %v841_v6 }
 0x101   :  { %v842_v2 = vand.u32 2147483647, %v2632_v35  ;;  %v740_v4 = vmul.f32 %v1951_v36, %v2566_v43  ;;  %v764_v8 = vmul.f32 %v2023_v44, %v2634_v37  ;;  %3331 = vst [vmem:[#allocation31_spill] sm:$0xff] %v2654_v25 }
 0x102   :  { %v1953_v10 = vpop.f32.mrf.mxu0  ;;  %v2025_v11 = vpop.f32.mrf.mxu1 }
 0x103   :  { %v874_v12 = vsub.f32 0.0, %v842_v2  ;;  %v2648_v15 = vadd.f32 %v2612_v9, %v740_v4  ;;  %v1954_v16 = vadd.f32 %v1953_v10, %v1952_v63  ;;  %v2026_v21 = vadd.f32 %v2025_v11, %v2024_v0  ;;  %v2666_v0 = vpop.permute.xlu1 %724 }
 0x104   :  { %v1955_v22 = vpop.f32.mrf.mxu0  ;;  %v2027_v23 = vpop.f32.mrf.mxu1  ;;  %v2660_v32 = vadd.f32 %v2612_v9, %v764_v8  ;;  %3333 = vst [vmem:[#allocation33_spill] sm:$0xff] %v2666_v0  ;;  %v896_v2 = vsub.f32 0.0, %v864_v20  ;;  %v866_v10 = vand.u32 2147483647, %v2654_v25 }
 0x105   :  { %v908_v24 = vmul.f32 1.442695, %v874_v12  ;;  %v843_v26 = vand.u32 2147483647, %v2648_v15  ;;  %v741_v27 = vmul.f32 %v1954_v16, %v2568_v45  ;;  %v765_v33 = vmul.f32 %v2026_v21, %v2650_v17 }
 0x106   :  { %3332 = vst [vmem:[#allocation32_spill] sm:$0xff] %v2660_v32  ;;  %v1956_v34 = vpop.f32.mrf.mxu0  ;;  %v2028_v36 = vpop.f32.mrf.mxu1  ;;  %v906_v21 = vmul.f32 1.442695, %v873_v28  ;;  %v952_v17 = vmul.f32 1.442695, %v896_v2 }
 0x107   :  { %2155 = vpow2.f32 %v908_v24  ;;  %v875_v38 = vsub.f32 0.0, %v843_v26  ;;  %v2664_v44 = vadd.f32 %v2612_v9, %v741_v27  ;;  %v1957_v63 = vadd.f32 %v1956_v34, %v1955_v22  ;;  %v2680_v34 = vpop.permute.xlu0 %729 }
 0x108   :  { %2157 = vpow2.f32 %v904_v19  ;;  %v2669_v3 = vadd.f32 %v2612_v9, %v765_v33  ;;  %v2029_v4 = vadd.f32 %v2028_v36, %v2027_v23  ;;  %v1958_v6 = vpop.f32.mrf.mxu0  ;;  %v2030_v8 = vpop.f32.mrf.mxu1  ;;  %v897_v24 = vsub.f32 0.0, %v865_v29  ;;  %3335 = vst [vmem:[#allocation35_spill] sm:$0xff] %v2680_v34 }
 0x109   :  { %v910_v11 = vmul.f32 1.442695, %v875_v38  ;;  %v844_v12 = vand.u32 2147483647, %v2664_v44  ;;  %v742_v16 = vmul.f32 %v1957_v63, %v2570_v46  ;;  %v867_v22 = vand.u32 2147483647, %v2660_v32 }
 0x10a   :  { %3334 = vst [vmem:[#allocation34_spill] sm:$0xff] %v2669_v3  ;;  %v766_v19 = vmul.f32 %v2029_v4, %v2666_v0  ;;  %v1959_v20 = vpop.f32.mrf.mxu0  ;;  %v2031_v26 = vpop.f32.mrf.mxu1  ;;  %v868_v23 = vand.u32 2147483647, %v2669_v3  ;;  %v898_v4 = vsub.f32 0.0, %v866_v10 }
 0x10b   :  { %2159 = vpow2.f32 %v910_v11  ;;  %v2678_v27 = vadd.f32 %v2612_v9, %v742_v16  ;;  %v1960_v33 = vadd.f32 %v1959_v20, %v1958_v6  ;;  %v876_v36 = vsub.f32 0.0, %v844_v12 }
 0x10c   :  { %v2683_v38 = vadd.f32 %v2612_v9, %v766_v19  ;;  %v2032_v28 = vadd.f32 %v2031_v26, %v2030_v8  ;;  %v1961_v29 = vpop.f32.mrf.mxu0  ;;  %v2033_v63 = vpop.f32.mrf.mxu1  ;;  %v899_v11 = vsub.f32 0.0, %v867_v22  ;;  %2161 = vpow2.f32 %v906_v21 }
 0x10d   :  { %v743_v0 = vmul.f32 %v1960_v33, %v2572_v47  ;;  %v845_v18 = vand.u32 2147483647, %v2678_v27  ;;  %v954_v20 = vmul.f32 1.442695, %v897_v24  ;;  %v900_v12 = vsub.f32 0.0, %v868_v23  ;;  %v2688_v19 = vpop.permute.xlu1 %734 }
 0x10e   :  { %3336 = vst [vmem:[#allocation36_spill] sm:$0xff] %v2683_v38  ;;  %v767_v16 = vmul.f32 %v2032_v28, %v2680_v34  ;;  %v1962_v13 = vpop.f32.mrf.mxu0  ;;  %v2034_v6 = vpop.f32.mrf.mxu1  ;;  %3337 = vst [vmem:[#allocation37_spill] sm:$0xff] %v2688_v19  ;;  %v912_v8 = vmul.f32 1.442695, %v876_v36  ;;  %v869_v26 = vand.u32 2147483647, %v2683_v38  ;;  %2163 = vpow2.f32 %v952_v17 }
 0x10f   :  { %v1963_v37 = vadd.f32 %v1962_v13, %v1961_v29  ;;  %v2692_v2 = vadd.f32 %v2612_v9, %v743_v0  ;;  %v2035_v10 = vadd.f32 %v2034_v6, %v2033_v63  ;;  %v956_v33 = vmul.f32 1.442695, %v898_v4 }
 0x110   :  { %v1964_v22 = vpop.f32.mrf.mxu0  ;;  %v958_v34 = vmul.f32 1.442695, %v899_v11  ;;  %v877_v30 = vsub.f32 0.0, %v845_v18  ;;  %v2696_v21 = vadd.f32 %v2612_v9, %v767_v16  ;;  %2165 = vpow2.f32 %v954_v20 }
 0x111   :  { %v744_v28 = vmul.f32 %v1963_v37, %v2574_v48  ;;  %v768_v13 = vmul.f32 %v2035_v10, %v2688_v19  ;;  %v960_v36 = vmul.f32 1.442695, %v900_v12  ;;  %2167 = vpow2.f32 %v912_v8 }
 0x112   :  { %3338 = vst [vmem:[#allocation38_spill] sm:$0xff] %v2696_v21  ;;  %v1965_v24 = vpop.f32.mrf.mxu0  ;;  %v901_v17 = vsub.f32 0.0, %v869_v26  ;;  %v846_v37 = vand.u32 2147483647, %v2692_v2  ;;  %2169 = vpow2.f32 %v956_v33  ;;  %v914_v12 = vmul.f32 1.442695, %v877_v30 }
 0x113   :  { %v2701_v0 = vadd.f32 %v2612_v9, %v744_v28  ;;  %v1966_v18 = vadd.f32 %v1965_v24, %v1964_v22  ;;  %v2711_v6 = vadd.f32 %v2612_v9, %v768_v13  ;;  %2171 = vpow2.f32 %v958_v34 }
 0x114   :  { %v2703_v29 = vpop.eup %2155  ;;  %v1967_v63 = vpop.f32.mrf.mxu0  ;;  %v870_v8 = vand.u32 2147483647, %v2696_v21  ;;  %2173 = vpow2.f32 %v960_v36  ;;  %v962_v33 = vmul.f32 1.442695, %v901_v17  ;;  %v878_v11 = vsub.f32 0.0, %v846_v37 }
 0x115   :  { %v2706_v4 = vpop.eup %2157  ;;  %v986_v16 = vadd.f32 1.0, %v2703_v29  ;;  %3339 = vst [vmem:[#allocation39_spill] sm:$0xff] %v2711_v6  ;;  %v847_v28 = vand.u32 2147483647, %v2701_v0  ;;  %v745_v13 = vmul.f32 %v1966_v18, %v2576_v49  ;;  %v871_v10 = vand.u32 2147483647, %v2711_v6 }
 0x116   :  { %v1968_v26 = vpop.f32.mrf.mxu0  ;;  %v902_v22 = vsub.f32 0.0, %v870_v8  ;;  %v968_v17 = vadd.f32 1.0, %v2706_v4  ;;  %v916_v30 = vmul.f32 1.442695, %v878_v11 }
 0x117   :  { %v1969_v23 = vadd.f32 %v1968_v26, %v1967_v63  ;;  %2175 = vlog2.f32 %v986_v16  ;;  %v2725_v36 = vadd.f32 %v2612_v9, %v745_v13  ;;  %v879_v18 = vsub.f32 0.0, %v847_v28 }
 0x118   :  { %v2718_v24 = vpop.eup %2159  ;;  %v1970_v20 = vpop.f32.mrf.mxu0  ;;  %2177 = vpow2.f32 %v914_v12  ;;  %v989_v13 = vmul.f32 -0.5, %v2703_v29  ;;  %v903_v49 = vsub.f32 0.0, %v871_v10  ;;  %v992_v10 = vand.u32 2147483647, %v2703_v29 }
 0x119   :  { %v995_v34 = vadd.f32 1.0, %v2718_v24  ;;  %v746_v63 = vmul.f32 %v1969_v23, %v2578_v50  ;;  %v2730_v16 = vpop.eup %2161  ;;  %v848_v12 = vand.u32 2147483647, %v2725_v36  ;;  %v998_v23 = vmul.f32 -0.5, %v2718_v24 }
 0x11a   :  { %v1971_v19 = vpop.f32.mrf.mxu0  ;;  %v964_v50 = vmul.f32 1.442695, %v902_v22  ;;  %v918_v11 = vmul.f32 1.442695, %v879_v18  ;;  %v990_v22 = vadd.f32 1.0, %v989_v13 }
 0x11b   :  { %2179 = vlog2.f32 %v995_v34  ;;  %v2736_v46 = vadd.f32 %v2612_v9, %v746_v63  ;;  %v1972_v34 = vadd.f32 %v1971_v19, %v1970_v20  ;;  %v2738_v37 = vpop.eup %2163  ;;  %v977_v63 = vadd.f32 1.0, %v2730_v16 }
 0x11c   :  { %2181 = vpow2.f32 %v962_v33  ;;  %v1973_v8 = vpop.f32.mrf.mxu0  ;;  %v880_v33 = vsub.f32 0.0, %v848_v12  ;;  %v966_v28 = vmul.f32 1.442695, %v903_v49  ;;  %v1001_v12 = vand.u32 2147483647, %v2718_v24 }
 0x11d   :  { %2183 = vlog2.f32 %v968_v17  ;;  %v747_v45 = vmul.f32 %v1972_v34, %v2580_v51  ;;  %v2743_v47 = vpop.eup %2165  ;;  %v849_v19 = vand.u32 2147483647, %v2736_v46  ;;  %v971_v34 = vmul.f32 -0.5, %v2706_v4 }
 0x11e   :  { %v1974_v26 = vpop.f32.mrf.mxu0  ;;  %2185 = vpow2.f32 %v916_v30  ;;  %v2748_v42 = vpop.eup %2167  ;;  %v999_v40 = vadd.f32 1.0, %v998_v23  ;;  %v920_v49 = vmul.f32 1.442695, %v880_v33  ;;  %vm2766_vm0 = vcmp.lt.f32.partialorder %v992_v10, 0.0004427343 }
 0x11f   :  { %v1975_v48 = vadd.f32 %v1974_v26, %v1973_v8  ;;  %v2751_v17 = vadd.f32 %v2612_v9, %v747_v45  ;;  %v2754_v26 = vpop.eup %2169  ;;  %2187 = vpow2.f32 %v964_v50  ;;  %v881_v50 = vsub.f32 0.0, %v849_v19 }
 0x120   :  { %v1976_v20 = vpop.f32.mrf.mxu0  ;;  %v2759_v51 = vpop.eup %2171  ;;  %2189 = vpow2.f32 %v918_v11  ;;  %v1004_v43 = vadd.f32 1.0, %v2748_v42  ;;  %v991_v41 = vmul.f32 %v2703_v29, %v990_v22  ;;  %v974_v11 = vand.u32 2147483647, %v2706_v4 }
 0x121   :  { %v748_v18 = vmul.f32 %v1975_v48, %v2582_v52  ;;  %v2764_v13 = vpop.eup %2173  ;;  %2191 = vlog2.f32 %v977_v63  ;;  %v850_v23 = vand.u32 2147483647, %v2751_v17  ;;  %vm2774_vm1 = vcmp.lt.f32.partialorder %v1001_v12, 0.0004427343 }
 0x122   :  { %v1977_v8 = vpop.f32.mrf.mxu0  ;;  %2193 = vpow2.f32 %v966_v28  ;;  %v972_v63 = vadd.f32 1.0, %v971_v34  ;;  %v1000_v29 = vmul.f32 %v2718_v24, %v999_v40  ;;  %v922_v38 = vmul.f32 1.442695, %v881_v50 }
 0x123   :  { %v2762_v45 = vadd.f32 %v2612_v9, %v748_v18  ;;  %v1978_v52 = vadd.f32 %v1977_v8, %v1976_v20  ;;  %v980_v8 = vmul.f32 -0.5, %v2730_v16  ;;  %2195 = vpow2.f32 %v920_v49 }
 0x124   :  { %v1979_v30 = vpop.f32.mrf.mxu0  ;;  %v2176_v33 = vpop.eup %2175  ;;  %v983_v32 = vand.u32 2147483647, %v2730_v16  ;;  %2197 = vlog2.f32 %v1004_v43  ;;  %vm2793_vm2 = vcmp.lt.f32.partialorder %v974_v11, 0.0004427343  ;;  %v973_v49 = vmul.f32 %v2706_v4, %v972_v63 }
 0x125   :  { %v851_v10 = vand.u32 2147483647, %v2762_v45  ;;  %v749_v19 = vmul.f32 %v1978_v52, %v2584_v53  ;;  %v2781_v6 = vpop.eup %2177  ;;  %v988_v34 = vmul.f32 0.6931472, %v2176_v33  ;;  %v882_v53 = vsub.f32 0.0, %v850_v23 }
 0x126   :  { %v1980_v20 = vpop.f32.mrf.mxu0  ;;  %v981_v50 = vadd.f32 1.0, %v980_v8  ;;  %v1007_v43 = vmul.f32 -0.5, %v2748_v42  ;;  %2199 = vpow2.f32 %v922_v38  ;;  %vm2805_vm3 = vcmp.lt.f32.partialorder %v983_v32, 0.0004427343 }
 0x127   :  { %v1981_v22 = vadd.f32 %v1980_v20, %v1979_v30  ;;  %v2790_v25 = vadd.f32 %v2612_v9, %v749_v19  ;;  %v883_v30 = vsub.f32 0.0, %v851_v10  ;;  %v1013_v19 = vadd.f32 1.0, %v2781_v6 }
 0x128   :  { %v2180_v12 = vpop.eup %2179  ;;  %v1982_v3 = vpop.f32.mrf.mxu0  ;;  %v994_v8 = vsel %vm2766_vm0, %v991_v41, %v988_v34  ;;  %v1008_v11 = vadd.f32 1.0, %v1007_v43 }
 0x129   :  { %v2787_v52 = vpop.eup %2181  ;;  %v750_v40 = vmul.f32 %v1981_v22, %v2586_v54  ;;  %v997_v28 = vmul.f32 0.6931472, %v2180_v12  ;;  %v924_v12 = vmul.f32 1.442695, %v882_v53  ;;  %v982_v22 = vmul.f32 %v2730_v16, %v981_v50 }
 0x12a   :  { %v1983_v20 = vpop.f32.mrf.mxu0  ;;  %v2184_v21 = vpop.eup %2183  ;;  %v926_v39 = vmul.f32 1.442695, %v883_v30  ;;  %2201 = vlog2.f32 %v1013_v19  ;;  %v3348_v53 = vmax.f32 %v2632_v35, 0.0  ;;  %v1010_v16 = vand.u32 2147483647, %v2748_v42 }
 0x12b   :  { %v2800_v23 = vadd.f32 %v2612_v9, %v750_v40  ;;  %v1984_v33 = vadd.f32 %v1983_v20, %v1982_v3  ;;  %v2809_v63 = vpop.eup %2185  ;;  %v852_v3 = vand.u32 2147483647, %v2790_v25  ;;  %v970_v20 = vmul.f32 0.6931472, %v2184_v21 }
 0x12c   :  { %v1985_v4 = vpop.f32.mrf.mxu0  ;;  %v2817_v54 = vpop.eup %2187  ;;  %v1003_v7 = vsel %vm2774_vm1, %v1000_v29, %v997_v28  ;;  %v1258_v34 = vadd.f32 %v994_v8, %v3348_v53  ;;  %v1022_v50 = vadd.f32 1.0, %v2809_v63  ;;  %2203 = vpow2.f32 %v924_v12 }
 0x12d   :  { %v751_v40 = vmul.f32 %v1984_v33, %v2588_v55  ;;  %v853_v38 = vand.u32 2147483647, %v2800_v23  ;;  %v2821_v41 = vpop.eup %2189  ;;  %v884_v29 = vsub.f32 0.0, %v852_v3  ;;  %v3349_v35 = vmax.f32 %v2648_v15, 0.0 }
 0x12e   :  { %v1986_v32 = vpop.f32.mrf.mxu0  ;;  %v2192_v43 = vpop.eup %2191  ;;  %v976_v8 = vsel %vm2793_vm2, %v973_v49, %v970_v20  ;;  %2205 = vpow2.f32 %v926_v39  ;;  %v2839_v12 = vmul.f32 %v2748_v42, %v1008_v11  ;;  %v1016_v3 = vmul.f32 -0.5, %v2781_v6 }
 0x12f   :  { %v1987_v48 = vadd.f32 %v1986_v32, %v1985_v4  ;;  %v2826_v33 = vadd.f32 %v2612_v9, %v751_v40  ;;  %v2832_v30 = vpop.eup %2193  ;;  %v1259_v19 = vadd.f32 %v1003_v7, %v3349_v35  ;;  %v885_v4 = vsub.f32 0.0, %v853_v38 }
 0x130   :  { %v1988_v21 = vpop.f32.mrf.mxu0  ;;  %v979_v40 = vmul.f32 0.6931472, %v2192_v43  ;;  %v2842_v18 = vpop.eup %2195  ;;  %2207 = vlog2.f32 %v1022_v50  ;;  %v928_v38 = vmul.f32 1.442695, %v884_v29  ;;  %v3350_v39 = vmax.f32 %v2617_v14, 0.0 }
 0x131   :  { %v752_v28 = vmul.f32 %v1987_v48, %v2590_v56  ;;  %v854_v15 = vand.u32 2147483647, %v2826_v33  ;;  %v2198_v49 = vpop.eup %2197  ;;  %v3351_v42 = vmax.f32 %v2628_v31, 0.0  ;;  %v1289_v43 = vpack.c.bf16 %v1259_v19, %v1258_v34 }
 0x132   :  { %v1989_v32 = vpop.f32.mrf.mxu0  ;;  %v985_v7 = vsel %vm2805_vm3, %v982_v22, %v979_v40  ;;  %v1256_v20 = vadd.f32 %v976_v8, %v3350_v39  ;;  %v930_v35 = vmul.f32 1.442695, %v885_v4  ;;  %v1019_v40 = vand.u32 2147483647, %v2781_v6 }
 0x133   :  { %v1990_v53 = vadd.f32 %v1989_v32, %v1988_v21  ;;  %v1257_v11 = vadd.f32 %v985_v7, %v3351_v42  ;;  %v2853_v21 = vadd.f32 %v2612_v9, %v752_v28  ;;  %vm2857_vm4 = vcmp.lt.f32.partialorder %v1010_v16, 0.0004427343  ;;  %v2865_v19 = vpop.eup %2199 }
 0x134   :  { %v1991_v24 = vpop.f32.mrf.mxu0  ;;  %v1017_v14 = vadd.f32 1.0, %v1016_v3  ;;  %v886_v8 = vsub.f32 0.0, %v854_v15  ;;  %v1006_v7 = vmul.f32 0.6931472, %v2198_v49  ;;  %v1025_v34 = vmul.f32 -0.5, %v2809_v63 }
 0x135   :  { %v753_v10 = vmul.f32 %v1990_v53, %v2592_v57  ;;  %v1288_v32 = vpack.c.bf16 %v1257_v11, %v1256_v20  ;;  %2209 = vpow2.f32 %v928_v38  ;;  %v855_v4 = vand.u32 2147483647, %v2853_v21 }
 0x136   :  { %v1992_v22 = vpop.f32.mrf.mxu0  ;;  %v1031_v53 = vadd.f32 1.0, %v2821_v41  ;;  %2211 = vpow2.f32 %v930_v35  ;;  %vm2871_vm5 = vcmp.lt.f32.partialorder %v1019_v40, 0.0004427343  ;;  %v1040_v49 = vadd.f32 1.0, %v2842_v18 }
 0x137   :  { %v1993_v50 = vadd.f32 %v1992_v22, %v1991_v24  ;;  %v2862_v31 = vadd.f32 %v2612_v9, %v753_v10  ;;  %2076 = vmatprep.mubr.bf16.mxu1 %v1288_v32  ;;  %v1018_v20 = vmul.f32 %v2781_v6, %v1017_v14  ;;  %v2202_v11 = vpop.eup %2201  ;;  %v932_v35 = vmul.f32 1.442695, %v886_v8 }
 0x138   :  { %v1994_v28 = vpop.f32.mrf.mxu0  ;;  %2077 = vmatmul.mubr.bf16.vlgmr.msra.gmra.mxu1 %v1289_v43  ;;  %v1012_v43 = vsel %vm2857_vm4, %v2839_v12, %v1006_v7  ;;  %v1026_v22 = vadd.f32 1.0, %v1025_v34  ;;  %2213 = vlog2.f32 %v1031_v53  ;;  %v887_v40 = vsub.f32 0.0, %v855_v4 }
 0x139   :  { %v754_v16 = vmul.f32 %v1993_v50, %v2594_v58  ;;  %v856_v38 = vand.u32 2147483647, %v2862_v31  ;;  %v1015_v50 = vmul.f32 0.6931472, %v2202_v11  ;;  %v1028_v8 = vand.u32 2147483647, %v2809_v63 }
 0x13a   :  { %v1995_v24 = vpop.f32.mrf.mxu0  ;;  %2215 = vlog2.f32 %v1040_v49  ;;  %v3356_v53 = vmax.f32 %v2664_v44, 0.0  ;;  %v1027_v49 = vmul.f32 %v2809_v63, %v1026_v22  ;;  %v934_v48 = vmul.f32 1.442695, %v887_v40 }
 0x13b   :  { %v2878_v39 = vadd.f32 %v2612_v9, %v754_v16  ;;  %v1996_v42 = vadd.f32 %v1995_v24, %v1994_v28  ;;  %v2886_v16 = vpop.eup %2203  ;;  %v1034_v28 = vmul.f32 -0.5, %v2821_v41  ;;  %v888_v12 = vsub.f32 0.0, %v856_v38 }
 0x13c   :  { %v1997_v10 = vpop.f32.mrf.mxu0  ;;  %v1021_v29 = vsel %vm2871_vm5, %v1018_v20, %v1015_v50  ;;  %v2896_v4 = vpop.eup %2205  ;;  %2217 = vpow2.f32 %v932_v35  ;;  %v1260_v24 = vadd.f32 %v1012_v43, %v3356_v53  ;;  %vm2905_vm6 = vcmp.lt.f32.partialorder %v1028_v8, 0.0004427343 }
 0x13d   :  { %v857_v32 = vand.u32 2147483647, %v2878_v39  ;;  %v755_v3 = vmul.f32 %v1996_v42, %v2596_v59  ;;  %v3357_v42 = vmax.f32 %v2678_v27, 0.0  ;;  %v2208_v38 = vpop.eup %2207  ;;  %v1037_v44 = vand.u32 2147483647, %v2821_v41 }
 0x13e   :  { %v1998_v14 = vpop.f32.mrf.mxu0  ;;  %v1049_v27 = vadd.f32 1.0, %v2865_v19  ;;  %v936_v43 = vmul.f32 1.442695, %v888_v12  ;;  %v1035_v40 = vadd.f32 1.0, %v1034_v28 }
 0x13f   :  { %v2894_v7 = vadd.f32 %v2612_v9, %v755_v3  ;;  %v1999_v34 = vadd.f32 %v1998_v14, %v1997_v10  ;;  %v1261_v11 = vadd.f32 %v1021_v29, %v3357_v42  ;;  %v889_v15 = vsub.f32 0.0, %v857_v32 }
 0x140   :  { %v2000_v6 = vpop.f32.mrf.mxu0  ;;  %v1043_v3 = vmul.f32 -0.5, %v2842_v18  ;;  %v1024_v14 = vmul.f32 0.6931472, %v2208_v38  ;;  %2219 = vlog2.f32 %v1049_v27  ;;  %vm2921_vm7 = vcmp.lt.f32.partialorder %v1037_v44, 0.0004427343 }
 0x141   :  { %v756_v20 = vmul.f32 %v1999_v34, %v2598_v60  ;;  %v1290_v10 = vpack.c.bf16 %v1261_v11, %v1260_v24  ;;  %v858_v63 = vand.u32 2147483647, %v2894_v7  ;;  %2221 = vpow2.f32 %v934_v48 }
 0x142   :  { %v2001_v35 = vpop.f32.mrf.mxu0  ;;  %v938_v34 = vmul.f32 1.442695, %v889_v15  ;;  %v1044_v53 = vadd.f32 1.0, %v1043_v3  ;;  %v1058_v24 = vadd.f32 1.0, %v2886_v16  ;;  %v2917_v42 = vpop.eup %2209  ;;  %2223 = vpow2.f32 %v936_v43 }
 0x143   :  { %v2913_v22 = vadd.f32 %v2612_v9, %v756_v20  ;;  %2080 = vmatprep.mubr.bf16.mxu1 %v1290_v10  ;;  %v2002_v8 = vadd.f32 %v2001_v35, %v2000_v6  ;;  %v2926_v20 = vpop.eup %2211  ;;  %v890_v48 = vsub.f32 0.0, %v858_v63  ;;  %v1036_v15 = vmul.f32 %v2821_v41, %v1035_v40 }
 0x144   :  { %v2003_v29 = vpop.f32.mrf.mxu0  ;;  %v1030_v10 = vsel %vm2905_vm6, %v1027_v49, %v1024_v14  ;;  %v1052_v27 = vmul.f32 -0.5, %v2865_v19  ;;  %2225 = vlog2.f32 %v1058_v24  ;;  %v1045_v43 = vmul.f32 %v2842_v18, %v1044_v53 }
 0x145   :  { %v859_v11 = vand.u32 2147483647, %v2913_v22  ;;  %v757_v38 = vmul.f32 %v2002_v8, %v2600_v61  ;;  %v2214_v12 = vpop.eup %2213  ;;  %2227 = vpow2.f32 %v938_v34  ;;  %v1046_v63 = vand.u32 2147483647, %v2842_v18 }
 0x146   :  { %v2004_v6 = vpop.f32.mrf.mxu0  ;;  %v1033_v40 = vmul.f32 0.6931472, %v2214_v12  ;;  %v1067_v14 = vadd.f32 1.0, %v2896_v4  ;;  %v1053_v18 = vadd.f32 1.0, %v1052_v27  ;;  %v1055_v12 = vand.u32 2147483647, %v2865_v19 }
 0x147   :  { %v2005_v3 = vadd.f32 %v2004_v6, %v2003_v29  ;;  %v2932_v35 = vadd.f32 %v2612_v9, %v757_v38  ;;  %v891_v41 = vsub.f32 0.0, %v859_v11  ;;  %v2216_v29 = vpop.eup %2215  ;;  %v940_v38 = vmul.f32 1.442695, %v890_v48 }
 0x148   :  { %v2006_v44 = vpop.f32.mrf.mxu0  ;;  %v3362_v6 = vmax.f32 %v2692_v2, 0.0  ;;  %v1039_v53 = vsel %vm2921_vm7, %v1036_v15, %v1033_v40  ;;  %2229 = vlog2.f32 %v1067_v14  ;;  %vm2954_vm8 = vcmp.lt.f32.partialorder %v1046_v63, 0.0004427343 }
 0x149   :  { %v758_v8 = vmul.f32 %v2005_v3, %v2602_v62  ;;  %v860_v50 = vand.u32 2147483647, %v2932_v35  ;;  %v2948_v32 = vpop.eup %2217  ;;  %v3363_v62 = vmax.f32 %v2701_v0, 0.0  ;;  %v1061_v27 = vmul.f32 -0.5, %v2886_v16 }
 0x14a   :  { %v2007_v49 = vpop.f32.mrf.mxu0  ;;  %v1262_v24 = vadd.f32 %v1030_v10, %v3362_v6  ;;  %v1042_v10 = vmul.f32 0.6931472, %v2216_v29  ;;  %v942_v6 = vmul.f32 1.442695, %v891_v41  ;;  %2231 = vpow2.f32 %v940_v38 }
 0x14b   :  { %v2943_v34 = vadd.f32 %v2612_v9, %v758_v8  ;;  %v2008_v3 = vadd.f32 %v2007_v49, %v2006_v44  ;;  %v1263_v48 = vadd.f32 %v1039_v53, %v3363_v62  ;;  %v892_v44 = vsub.f32 0.0, %v860_v50 }
 0x14c   :  { %v2009_v11 = vpop.f32.mrf.mxu0  ;;  %v1054_v62 = vmul.f32 %v2865_v19, %v1053_v18  ;;  %vm2963_vm9 = vcmp.lt.f32.partialorder %v1055_v12, 0.0004427343  ;;  %v1064_v63 = vand.u32 2147483647, %v2886_v16  ;;  %v1048_v29 = vsel %vm2954_vm8, %v1045_v43, %v1042_v10 }
 0x14d   :  { %v861_v2 = vand.u32 2147483647, %v2943_v34  ;;  %v759_v8 = vmul.f32 %v2008_v3, %v2604_v1  ;;  %v1291_v40 = vpack.c.bf16 %v1263_v48, %v1262_v24  ;;  %v2220_v50 = vpop.eup %2219  ;;  %v1070_v24 = vmul.f32 -0.5, %v2896_v4 }
 0x14e   :  { %v2010_v15 = vpop.f32.mrf.mxu0  ;;  %v1076_v3 = vadd.f32 1.0, %v2917_v42  ;;  %v2973_v53 = vpop.eup %2221  ;;  %2233 = vpow2.f32 %v942_v6  ;;  %v944_v19 = vmul.f32 1.442695, %v892_v44  ;;  %v1051_v18 = vmul.f32 0.6931472, %v2220_v50 }
 0x14f   :  { %v893_v49 = vsub.f32 0.0, %v861_v2  ;;  %v2960_v0 = vadd.f32 %v2612_v9, %v759_v8  ;;  %v2011_v41 = vadd.f32 %v2010_v15, %v2009_v11  ;;  %2081 = vmatmul.mubr.bf16.gmra.mxu1 %v1291_v40  ;;  %v1062_v2 = vadd.f32 1.0, %v1061_v27  ;;  %v2977_v28 = vpop.eup %2223 }
 0x150   :  { %v1085_v8 = vadd.f32 1.0, %v2926_v20  ;;  %v1057_v43 = vsel %vm2963_vm9, %v1054_v62, %v1051_v18  ;;  %v3368_v10 = vmax.f32 %v2725_v36, 0.0  ;;  %2235 = vlog2.f32 %v1076_v3 }
 0x151   :  { %v862_v38 = vand.u32 2147483647, %v2960_v0  ;;  %v760_v12 = vmul.f32 %v2011_v41, %v2606_v5  ;;  %v946_v11 = vmul.f32 1.442695, %v893_v49  ;;  %v2226_v6 = vpop.eup %2225  ;;  %v3369_v44 = vmax.f32 %v2736_v46, 0.0 }
 0x152   :  { %v1264_v15 = vadd.f32 %v1048_v29, %v3368_v10  ;;  %v1071_v27 = vadd.f32 1.0, %v1070_v24  ;;  %2237 = vlog2.f32 %v1085_v8  ;;  %v2988_v50 = vpop.eup %2227  ;;  %v1060_v36 = vmul.f32 0.6931472, %v2226_v6 }
 0x153   :  { %v894_v48 = vsub.f32 0.0, %v862_v38  ;;  %v2984_v40 = vadd.f32 %v2612_v9, %v760_v12  ;;  %v1265_v49 = vadd.f32 %v1057_v43, %v3369_v44  ;;  %v826_v38 = vmax.f32 %v2894_v7, 0.0 }
 0x154   :  { %2239 = vpow2.f32 %v944_v19  ;;  %v1073_v9 = vand.u32 2147483647, %v2896_v4  ;;  %v1079_v29 = vmul.f32 -0.5, %v2917_v42  ;;  %v827_v46 = vmax.f32 %v2913_v22, 0.0 }
 0x155   :  { %v948_v41 = vmul.f32 1.442695, %v894_v48  ;;  %v863_v62 = vand.u32 2147483647, %v2984_v40  ;;  %2241 = vpow2.f32 %v946_v11  ;;  %v1292_v14 = vpack.c.bf16 %v1265_v49, %v1264_v15  ;;  %v2230_v12 = vpop.eup %2229 }
 0x156   :  { %v1063_v24 = vmul.f32 %v2886_v16, %v1062_v2  ;;  %v1094_v18 = vadd.f32 1.0, %v2948_v32  ;;  %vm2997_vm10 = vcmp.lt.f32.partialorder %v1064_v63, 0.0004427343  ;;  %v1072_v11 = vmul.f32 %v2896_v4, %v1071_v27 }
 0x157   :  { %v895_v3 = vsub.f32 0.0, %v863_v62  ;;  %2084 = vmatprep.mubr.bf16.mxu1 %v1292_v14  ;;  %2243 = vpow2.f32 %v948_v41  ;;  %v1088_v48 = vmul.f32 -0.5, %v2926_v20  ;;  %v1069_v10 = vmul.f32 0.6931472, %v2230_v12  ;;  %v3007_v63 = vpop.eup %2231 }
 0x158   :  { %v1066_v43 = vsel %vm2997_vm10, %v1063_v24, %v1060_v36  ;;  %2245 = vlog2.f32 %v1094_v18  ;;  %vm1074_vm11 = vcmp.lt.f32.partialorder %v1073_v9, 0.0004427343  ;;  %v1080_v16 = vadd.f32 1.0, %v1079_v29 }
 0x159   :  { %v950_v8 = vmul.f32 1.442695, %v895_v3  ;;  %v1082_v2 = vand.u32 2147483647, %v2917_v42  ;;  %v1103_v15 = vadd.f32 1.0, %v2973_v53  ;;  %v1075_v6 = vsel %vm1074_vm11, %v1072_v11, %v1069_v10 }
 0x15a   :  { %v1091_v4 = vand.u32 2147483647, %v2926_v20  ;;  %v1097_v44 = vmul.f32 -0.5, %v2948_v32  ;;  %v3372_v49 = vmax.f32 %v2751_v17, 0.0  ;;  %v3373_v27 = vmax.f32 %v2762_v45, 0.0 }
 0x15b   :  { %2247 = vpow2.f32 %v950_v8  ;;  %v1112_v36 = vadd.f32 1.0, %v2977_v28  ;;  %v828_v14 = vmax.f32 %v2932_v35, 0.0  ;;  %v1089_v9 = vadd.f32 1.0, %v1088_v48  ;;  %v3019_v24 = vpop.eup %2233 }
 0x15c   :  { %v1266_v41 = vadd.f32 %v1066_v43, %v3372_v49  ;;  %v1267_v62 = vadd.f32 %v1075_v6, %v3373_v27  ;;  %2249 = vlog2.f32 %v1103_v15  ;;  %v1100_v29 = vand.u32 2147483647, %v2948_v32 }
 0x15d   :  { %v1121_v3 = vadd.f32 1.0, %v2988_v50  ;;  %v829_v18 = vmax.f32 %v2943_v34, 0.0  ;;  %2251 = vlog2.f32 %v1112_v36  ;;  %v1081_v45 = vmul.f32 %v2917_v42, %v1080_v16  ;;  %v2236_v48 = vpop.eup %2235 }
 0x15e   :  { %v1293_v12 = vpack.c.bf16 %v1267_v62, %v1266_v41  ;;  %vm3024_vm12 = vcmp.lt.f32.partialorder %v1082_v2, 0.0004427343  ;;  %v1098_v11 = vadd.f32 1.0, %v1097_v44  ;;  %vm3028_vm13 = vcmp.lt.f32.partialorder %v1091_v4, 0.0004427343 }
 0x15f   :  { %2253 = vlog2.f32 %v1121_v3  ;;  %v1106_v43 = vmul.f32 -0.5, %v2973_v53  ;;  %v1115_v10 = vmul.f32 -0.5, %v2977_v28  ;;  %v1130_v15 = vadd.f32 1.0, %v3007_v63  ;;  %v2238_v6 = vpop.eup %2237 }
 0x160   :  { %2085 = vmatmul.mubr.bf16.gmra.mxu1 %v1293_v12  ;;  %v1078_v42 = vmul.f32 0.6931472, %v2236_v48  ;;  %v1090_v16 = vmul.f32 %v2926_v20, %v1089_v9  ;;  %vm3036_vm14 = vcmp.lt.f32.partialorder %v1100_v29, 0.0004427343  ;;  %v1139_v44 = vadd.f32 1.0, %v3019_v24 }
 0x161   :  { %v3041_v4 = vpop.eup %2239  ;;  %v1087_v49 = vmul.f32 0.6931472, %v2238_v6  ;;  %v1109_v41 = vand.u32 2147483647, %v2973_v53  ;;  %v1124_v27 = vmul.f32 -0.5, %v2988_v50  ;;  %2255 = vlog2.f32 %v1130_v15 }
 0x162   :  { %v3045_v62 = vpop.eup %2241  ;;  %v1084_v36 = vsel %vm3024_vm12, %v1081_v45, %v1078_v42  ;;  %v1099_v20 = vmul.f32 %v2948_v32, %v1098_v11  ;;  %v1133_v9 = vmul.f32 -0.5, %v3007_v63  ;;  %2257 = vlog2.f32 %v1139_v44 }
 0x163   :  { %v1093_v29 = vsel %vm3028_vm13, %v1090_v16, %v1087_v49  ;;  %v1107_v3 = vadd.f32 1.0, %v1106_v43  ;;  %v1116_v12 = vadd.f32 1.0, %v1115_v10  ;;  %v1118_v48 = vand.u32 2147483647, %v2977_v28 }
 0x164   :  { %v3054_v6 = vpop.eup %2243  ;;  %v3380_v15 = vmax.f32 %v2790_v25, 0.0  ;;  %v3381_v19 = vmax.f32 %v2800_v23, 0.0  ;;  %v1127_v32 = vand.u32 2147483647, %v2988_v50  ;;  %v1148_v11 = vadd.f32 1.0, %v3041_v4 }
 0x165   :  { %v2246_v42 = vpop.eup %2245  ;;  %vm3062_vm15 = vcmp.lt.f32.partialorder %v1109_v41, 0.0004427343  ;;  %v1125_v43 = vadd.f32 1.0, %v1124_v27  ;;  %v1136_v10 = vand.u32 2147483647, %v3007_v63  ;;  %v1157_v16 = vadd.f32 1.0, %v3045_v62 }
 0x166   :  { %v1268_v17 = vadd.f32 %v1084_v36, %v3380_v15  ;;  %v1269_v45 = vadd.f32 %v1093_v29, %v3381_v19  ;;  %v1096_v25 = vmul.f32 0.6931472, %v2246_v42  ;;  %v1134_v49 = vadd.f32 1.0, %v1133_v9 }
 0x167   :  { %2259 = vlog2.f32 %v1148_v11  ;;  %v1108_v36 = vmul.f32 %v2973_v53, %v1107_v3  ;;  %vm3071_vm0 = vcmp.lt.f32.partialorder %v1118_v48, 0.0004427343  ;;  %v1142_v41 = vmul.f32 -0.5, %v3019_v24 }
 0x168   :  { %v1294_v44 = vpack.c.bf16 %v1269_v45, %v1268_v17  ;;  %v3068_v23 = vpop.eup %2247  ;;  %2261 = vlog2.f32 %v1157_v16  ;;  %v1117_v15 = vmul.f32 %v2977_v28, %v1116_v12  ;;  %vm3077_vm1 = vcmp.lt.f32.partialorder %v1127_v32, 0.0004427343 }
 0x169   :  { %v2250_v27 = vpop.eup %2249  ;;  %v1145_v9 = vand.u32 2147483647, %v3019_v24  ;;  %v1166_v19 = vadd.f32 1.0, %v3054_v6  ;;  %v1102_v53 = vsel %vm3036_vm14, %v1099_v20, %v1096_v25  ;;  %v1126_v48 = vmul.f32 %v2988_v50, %v1125_v43 }
 0x16a   :  { %2088 = vmatprep.mubr.bf16.mxu1 %v1294_v44  ;;  %v1105_v3 = vmul.f32 0.6931472, %v2250_v27  ;;  %v1151_v45 = vmul.f32 -0.5, %v3041_v4  ;;  %v2252_v11 = vpop.eup %2251  ;;  %v1135_v42 = vmul.f32 %v3007_v63, %v1134_v49  ;;  %vm3088_vm2 = vcmp.lt.f32.partialorder %v1136_v10, 0.0004427343 }
 0x16b   :  { %v1160_v12 = vmul.f32 -0.5, %v3045_v62  ;;  %2263 = vlog2.f32 %v1166_v19  ;;  %v1114_v20 = vmul.f32 0.6931472, %v2252_v11  ;;  %v1143_v16 = vadd.f32 1.0, %v1142_v41 }
 0x16c   :  { %v2254_v32 = vpop.eup %2253  ;;  %v1111_v2 = vsel %vm3062_vm15, %v1108_v36, %v1105_v3  ;;  %v1175_v50 = vadd.f32 1.0, %v3068_v23  ;;  %v3390_v43 = vmax.f32 %v2826_v33, 0.0  ;;  %v3391_v63 = vmax.f32 %v2853_v21, 0.0 }
 0x16d   :  { %v1123_v25 = vmul.f32 0.6931472, %v2254_v32  ;;  %vm3100_vm3 = vcmp.lt.f32.partialorder %v1145_v9, 0.0004427343  ;;  %v1120_v27 = vsel %vm3071_vm0, %v1117_v15, %v1114_v20  ;;  %v1152_v8 = vadd.f32 1.0, %v1151_v45 }
 0x16e   :  { %v1270_v44 = vadd.f32 %v1102_v53, %v3390_v43  ;;  %v1271_v10 = vadd.f32 %v1111_v2, %v3391_v63  ;;  %v1154_v36 = vand.u32 2147483647, %v3041_v4  ;;  %2265 = vlog2.f32 %v1175_v50  ;;  %v2256_v41 = vpop.eup %2255 }
 0x16f   :  { %v1129_v33 = vsel %vm3077_vm1, %v1126_v48, %v1123_v25  ;;  %v1161_v53 = vadd.f32 1.0, %v1160_v12  ;;  %v1184_v21 = vadd.f32 1.0, %v2738_v37  ;;  %v2258_v3 = vpop.eup %2257  ;;  %v3394_v9 = vmax.f32 %v2862_v31, 0.0 }
 0x170   :  { %v1295_v19 = vpack.c.bf16 %v1271_v10, %v1270_v44  ;;  %v3395_v32 = vmax.f32 %v2878_v39, 0.0  ;;  %v1132_v15 = vmul.f32 0.6931472, %v2256_v41  ;;  %v1163_v45 = vand.u32 2147483647, %v3045_v62 }
 0x171   :  { %v1272_v11 = vadd.f32 %v1120_v27, %v3394_v9  ;;  %v1141_v2 = vmul.f32 0.6931472, %v2258_v3  ;;  %v1144_v20 = vmul.f32 %v3019_v24, %v1143_v16  ;;  %v1169_v17 = vmul.f32 -0.5, %v3054_v6 }
 0x172   :  { %v1273_v29 = vadd.f32 %v1129_v33, %v3395_v32  ;;  %2089 = vmatmul.mubr.bf16.gmra.mxu1 %v1295_v19  ;;  %2267 = vlog2.f32 %v1184_v21  ;;  %v1138_v12 = vsel %vm3088_vm2, %v1135_v42, %v1132_v15  ;;  %vm3119_vm4 = vcmp.lt.f32.partialorder %v1154_v36, 0.0004427343 }
 0x173   :  { %v1193_v39 = vadd.f32 1.0, %v2743_v47  ;;  %v1147_v50 = vsel %vm3100_vm3, %v1144_v20, %v1141_v2  ;;  %v1153_v43 = vmul.f32 %v3041_v4, %v1152_v8  ;;  %v1162_v24 = vmul.f32 %v3045_v62, %v1161_v53 }
 0x174   :  { %v1296_v48 = vpack.c.bf16 %v1273_v29, %v1272_v11  ;;  %v1178_v16 = vmul.f32 -0.5, %v3068_v23  ;;  %v2260_v44 = vpop.eup %2259  ;;  %v1274_v42 = vadd.f32 %v1138_v12, %v826_v38  ;;  %v1275_v28 = vadd.f32 %v1147_v50, %v827_v46 }
 0x175   :  { %vm3133_vm5 = vcmp.lt.f32.partialorder %v1163_v45, 0.0004427343  ;;  %2269 = vlog2.f32 %v1193_v39  ;;  %v2262_v10 = vpop.eup %2261  ;;  %v1150_v25 = vmul.f32 0.6931472, %v2260_v44  ;;  %v1170_v4 = vadd.f32 1.0, %v1169_v17 }
 0x176   :  { %2092 = vmatprep.mubr.bf16.mxu1 %v1296_v48  ;;  %v1187_v62 = vmul.f32 -0.5, %v2738_v37  ;;  %v1202_v49 = vadd.f32 1.0, %v2754_v26  ;;  %v1297_v27 = vpack.c.bf16 %v1275_v28, %v1274_v42  ;;  %v1159_v8 = vmul.f32 0.6931472, %v2262_v10 }
 0x177   :  { %v1172_v7 = vand.u32 2147483647, %v3054_v6  ;;  %v1196_v38 = vmul.f32 -0.5, %v2743_v47  ;;  %v1156_v22 = vsel %vm3119_vm4, %v1153_v43, %v1150_v25  ;;  %v1179_v46 = vadd.f32 1.0, %v1178_v16 }
 0x178   :  { %v1181_v36 = vand.u32 2147483647, %v3068_v23  ;;  %2271 = vlog2.f32 %v1202_v49  ;;  %v2264_v41 = vpop.eup %2263  ;;  %v831_v19 = vmax.f32 %v2984_v40, 0.0  ;;  %v1165_v33 = vsel %vm3133_vm5, %v1162_v24, %v1159_v8 }
 0x179   :  { %v1190_v53 = vand.u32 2147483647, %v2738_v37  ;;  %v1211_v21 = vadd.f32 1.0, %v2759_v51  ;;  %v1276_v3 = vadd.f32 %v1156_v22, %v828_v14  ;;  %v1277_v9 = vadd.f32 %v1165_v33, %v829_v18 }
 0x17a   :  { %2093 = vmatmul.mubr.bf16.gmra.mxu1 %v1297_v27  ;;  %v1168_v11 = vmul.f32 0.6931472, %v2264_v41  ;;  %v1188_v32 = vadd.f32 1.0, %v1187_v62  ;;  %v1171_v29 = vmul.f32 %v3054_v6, %v1170_v4  ;;  %v1197_v15 = vadd.f32 1.0, %v1196_v38 }
 0x17b   :  { %2273 = vlog2.f32 %v1211_v21  ;;  %v1220_v40 = vadd.f32 1.0, %v2764_v13  ;;  %v2266_v45 = vpop.eup %2265  ;;  %v1298_v2 = vpack.c.bf16 %v1277_v9, %v1276_v3  ;;  %vm3155_vm6 = vcmp.lt.f32.partialorder %v1172_v7, 0.0004427343  ;;  %v3409_v7 = vld [vmem:[#allocation28_spill] sm:$0xff] }
 0x17c   :  { %v1180_v35 = vmul.f32 %v3068_v23, %v1179_v46  ;;  %vm3160_vm7 = vcmp.lt.f32.partialorder %v1181_v36, 0.0004427343  ;;  %v1174_v34 = vsel %vm3155_vm6, %v1171_v29, %v1168_v11  ;;  %v1177_v18 = vmul.f32 0.6931472, %v2266_v45  ;;  %v3415_v29 = vld [vmem:[#allocation31_spill] sm:$0xff] }
 0x17d   :  { %v1199_v6 = vand.u32 2147483647, %v2743_v47  ;;  %v1205_v17 = vmul.f32 -0.5, %v2754_v26  ;;  %2096 = vmatprep.mubr.bf16.mxu1 %v1298_v2  ;;  %v1189_v48 = vmul.f32 %v2738_v37, %v1188_v32  ;;  %vm3169_vm8 = vcmp.lt.f32.partialorder %v1190_v53, 0.0004427343  ;;  %v3413_v53 = vld [vmem:[#allocation29_spill] sm:$0xff] }
 0x17e   :  { %2275 = vlog2.f32 %v1220_v40  ;;  %v1229_v23 = vadd.f32 1.0, %v2787_v52  ;;  %v1183_v39 = vsel %vm3160_vm7, %v1180_v35, %v1177_v18  ;;  %v1198_v50 = vmul.f32 %v2743_v47, %v1197_v15 }
 0x17f   :  { %v2268_v31 = vpop.eup %2267  ;;  %v1214_v43 = vmul.f32 -0.5, %v2759_v51  ;;  %v1238_v24 = vadd.f32 1.0, %v2817_v54  ;;  %v3406_v16 = vmax.f32 %v2960_v0, 0.0  ;;  %v1279_v44 = vadd.f32 %v1183_v39, %v831_v19 }
 0x180   :  { %v1186_v42 = vmul.f32 0.6931472, %v2268_v31  ;;  %2277 = vlog2.f32 %v1229_v23  ;;  %vm3181_vm9 = vcmp.lt.f32.partialorder %v1199_v6, 0.0004427343  ;;  %v1206_v63 = vadd.f32 1.0, %v1205_v17  ;;  %v3430_v31 = vld [vmem:[#allocation16_spill] sm:$0xff] }
 0x181   :  { %v1278_v37 = vadd.f32 %v1174_v34, %v3406_v16  ;;  %v1208_v10 = vand.u32 2147483647, %v2754_v26  ;;  %2279 = vlog2.f32 %v1238_v24  ;;  %v1223_v62 = vmul.f32 -0.5, %v2764_v13 }
 0x182   :  { %v2270_v25 = vpop.eup %2269  ;;  %v1192_v4 = vsel %vm3169_vm8, %v1189_v48, %v1186_v42  ;;  %v1247_v0 = vadd.f32 1.0, %v2832_v30  ;;  %v1215_v27 = vadd.f32 1.0, %v1214_v43  ;;  %v1232_v8 = vmul.f32 -0.5, %v2787_v52 }
 0x183   :  { %v1299_v47 = vpack.c.bf16 %v1279_v44, %v1278_v37  ;;  %v1195_v49 = vmul.f32 0.6931472, %v2270_v25  ;;  %v3410_v38 = vmax.f32 %v3409_v7, 0.0  ;;  %v1217_v46 = vand.u32 2147483647, %v2759_v51 }
 0x184   :  { %2281 = vlog2.f32 %v1247_v0  ;;  %v1207_v19 = vmul.f32 %v2754_v26, %v1206_v63  ;;  %vm3197_vm10 = vcmp.lt.f32.partialorder %v1208_v10, 0.0004427343  ;;  %v3414_v21 = vmax.f32 %v3413_v53, 0.0  ;;  %v3416_v26 = vld [vmem:[#allocation32_spill] sm:$0xff] }
 0x185   :  { %2097 = vmatmul.mubr.bf16.gmra.mxu1 %v1299_v47  ;;  %v1280_v22 = vadd.f32 %v1192_v4, %v3410_v38  ;;  %v2272_v36 = vpop.eup %2271  ;;  %v1201_v41 = vsel %vm3181_vm9, %v1198_v50, %v1195_v49  ;;  %v1224_v11 = vadd.f32 1.0, %v1223_v62  ;;  %v1241_v32 = vmul.f32 -0.5, %v2817_v54  ;;  %v3421_v47 = vld [vmem:[#allocation34_spill] sm:$0xff]  ;;  %v3422_v62 = vld [vmem:[#allocation36_spill] sm:$0xff] }
 0x186   :  { %v1281_v3 = vadd.f32 %v1201_v41, %v3414_v21  ;;  %v1204_v9 = vmul.f32 0.6931472, %v2272_v36  ;;  %v834_v15 = vmax.f32 %v3415_v29, 0.0  ;;  %v1216_v40 = vmul.f32 %v2759_v51, %v1215_v27  ;;  %v3423_v41 = vld [vmem:[#allocation38_spill] sm:$0xff] }
 0x187   :  { %v1226_v45 = vand.u32 2147483647, %v2764_v13  ;;  %v1233_v2 = vadd.f32 1.0, %v1232_v8  ;;  %v835_v35 = vmax.f32 %v3416_v26, 0.0  ;;  %vm1218_vm11 = vcmp.lt.f32.partialorder %v1217_v46, 0.0004427343 }
 0x188   :  { %v2274_v20 = vpop.eup %2273  ;;  %v1300_v14 = vpack.c.bf16 %v1281_v3, %v1280_v22  ;;  %v1250_v34 = vmul.f32 -0.5, %v2832_v30  ;;  %v1210_v18 = vsel %vm3197_vm10, %v1207_v19, %v1204_v9  ;;  %v1235_v17 = vand.u32 2147483647, %v2787_v52  ;;  %v3424_v19 = vld [vmem:[#allocation39_spill] sm:$0xff]  ;;  %v3427_v26 = vld [vmem:[#allocation9_spill] sm:$0xff] }
 0x189   :  { %v1213_v6 = vmul.f32 0.6931472, %v2274_v20  ;;  %v1225_v48 = vmul.f32 %v2764_v13, %v1224_v11  ;;  %v1242_v51 = vadd.f32 1.0, %v1241_v32  ;;  %vm3213_vm12 = vcmp.lt.f32.partialorder %v1226_v45, 0.0004427343  ;;  %v3426_v45 = vld [vmem:[#allocation12_spill] sm:$0xff] }
 0x18a   :  { %2100 = vmatprep.mubr.bf16.mxu1 %v1300_v14  ;;  %v1234_v39 = vmul.f32 %v2787_v52, %v1233_v2  ;;  %v1244_v50 = vand.u32 2147483647, %v2817_v54  ;;  %v1282_v43 = vadd.f32 %v1210_v18, %v834_v15  ;;  %v1251_v37 = vadd.f32 1.0, %v1250_v34  ;;  %v3425_v15 = vld [vmem:[#allocation10_spill] sm:$0xff]  ;;  %v3428_v34 = vld [vmem:[#allocation11_spill] sm:$0xff] }
 0x18b   :  { %v2276_v12 = vpop.eup %2275  ;;  %v1219_v23 = vsel %vm1218_vm11, %v1216_v40, %v1213_v6  ;;  %vm3219_vm13 = vcmp.lt.f32.partialorder %v1235_v17, 0.0004427343  ;;  %v1253_v13 = vand.u32 2147483647, %v2832_v30  ;;  %v1243_v52 = vmul.f32 %v2817_v54, %v1242_v51 }
 0x18c   :  { %v1283_v24 = vadd.f32 %v1219_v23, %v835_v35  ;;  %v1222_v16 = vmul.f32 0.6931472, %v2276_v12  ;;  %v836_v4 = vmax.f32 %v3421_v47, 0.0  ;;  %v837_v0 = vmax.f32 %v3422_v62, 0.0  ;;  %v3429_v12 = vld [vmem:[#allocation15_spill] sm:$0xff]  ;;  %v3435_v62 = vld [vmem:[#allocation17_spill] sm:$0xff] }
 0x18d   :  { %v2278_v44 = vpop.eup %2277  ;;  %vm1245_vm14 = vcmp.lt.f32.partialorder %v1244_v50, 0.0004427343  ;;  %v1252_v8 = vmul.f32 %v2832_v30, %v1251_v37  ;;  %vm1254_vm15 = vcmp.lt.f32.partialorder %v1253_v13, 0.0004427343  ;;  %v838_v54 = vmax.f32 %v3423_v41, 0.0  ;;  %v3432_v37 = vld [vmem:[#allocation14_spill] sm:$0xff] }
 0x18e   :  { %v2280_v28 = vpop.eup %2279  ;;  %v1301_v63 = vpack.c.bf16 %v1283_v24, %v1282_v43  ;;  %v1228_v10 = vsel %vm3213_vm12, %v1225_v48, %v1222_v16  ;;  %v1231_v25 = vmul.f32 0.6931472, %v2278_v44  ;;  %v839_v33 = vmax.f32 %v3424_v19, 0.0  ;;  %v3431_v43 = vld [vmem:[#allocation13_spill] sm:$0xff] }
 0x18f   :  { %v1240_v49 = vmul.f32 0.6931472, %v2280_v28  ;;  %v1284_v38 = vadd.f32 %v1228_v10, %v836_v4  ;;  %v3433_v10 = vld [vmem:[#allocation19_spill] sm:$0xff]  ;;  %v3437_v19 = vld [vmem:[#allocation21_spill] sm:$0xff] }
 0x190   :  { %2101 = vmatmul.mubr.bf16.gmra.mxu1 %v1301_v63  ;;  %v1237_v27 = vsel %vm3219_vm13, %v1234_v39, %v1231_v25 }
 0x191   :  { %v2282_v7 = vpop.eup %2281  ;;  %v1285_v22 = vadd.f32 %v1237_v27, %v837_v0  ;;  %v1246_v46 = vsel %vm1245_vm14, %v1243_v52, %v1240_v49  ;;  %v3434_v52 = vld [vmem:[#allocation20_spill] sm:$0xff]  ;;  %v3436_v27 = vld [vmem:[#allocation18_spill] sm:$0xff] }
 0x192   :  { %v1249_v36 = vmul.f32 0.6931472, %v2282_v7  ;;  %v1286_v3 = vadd.f32 %v1246_v46, %v838_v54 }
 0x193   :  { %v1302_v53 = vpack.c.bf16 %v1285_v22, %v1284_v38 }
 0x194   :  { %v1255_v21 = vsel %vm1254_vm15, %v1252_v8, %v1249_v36 }
 0x195   :  { %2104 = vmatprep.mubr.bf16.mxu1 %v1302_v53  ;;  %v1287_v9 = vadd.f32 %v1255_v21, %v839_v33  ;;  %v3438_v21 = vld [vmem:[#allocation22_spill] sm:$0xff] }
 0x197   :  { %v1303_v11 = vpack.c.bf16 %v1287_v9, %v1286_v3 }
 0x199   :  { %2105 = vmatmul.mubr.bf16.gmra.mxu1 %v1303_v11 }
 0x1f8   :  { %v2078_v32 = vpop.f32.mrf.mxu1 }
 0x1f9   :  { %v1531_v40 = vmul.f32 %v2078_v32, %v3425_v15 }
 0x1fa   :  { %v1402_v29 = vpop.f32.mrf.mxu1 }
 0x1fb   :  { %v1529_v35 = vmul.f32 %v1402_v29, %v3427_v26 }
 0x1fc   :  { %v2079_v30 = vpop.f32.mrf.mxu1 }
 0x1fd   :  { %v1532_v2 = vmul.f32 %v2079_v30, %v3426_v45 }
 0x1fe   :  { %v1405_v20 = vpop.f32.mrf.mxu1 }
 0x1ff   :  { %v1837_v14 = vpack.c.bf16 %v1532_v2, %v1531_v40  ;;  %v1530_v18 = vmul.f32 %v1405_v20, %v3428_v34 }
 0x201   :  { %1909 = vst [vmem:[#allocation6 + $0x8] sm:$0xff] %v1837_v14   ;;  %v1832_v6 = vpack.c.bf16 %v1530_v18, %v1529_v35 }
 0x203   :  { %1833 = vst [vmem:[#allocation6] sm:$0xff] %v1832_v6   ;;  %v3439_v6 = vld [vmem:[#allocation23_spill] sm:$0xff] }
 0x20f   :  { %v2082_v17 = vpop.f32.mrf.mxu1 }
 0x210   :  { %v1535_v23 = vmul.f32 %v2082_v17, %v3429_v12  ;;  %v3440_v12 = vld [vmem:[#allocation26_spill] sm:$0xff] }
 0x211   :  { %v1418_v48 = vpop.f32.mrf.mxu1 }
 0x212   :  { %v1533_v24 = vmul.f32 %v1418_v48, %v3431_v43 }
 0x213   :  { %v2083_v51 = vpop.f32.mrf.mxu1 }
 0x214   :  { %v1536_v39 = vmul.f32 %v2083_v51, %v3430_v31  ;;  %v3441_v31 = vld [vmem:[#allocation27_spill] sm:$0xff] }
 0x215   :  { %v1421_v50 = vpop.f32.mrf.mxu1 }
 0x216   :  { %v1847_v16 = vpack.c.bf16 %v1536_v39, %v1535_v23  ;;  %v1534_v44 = vmul.f32 %v1421_v50, %v3432_v37 }
 0x218   :  { %1911 = vst [vmem:[#allocation6 + $0x18] sm:$0xff] %v1847_v16   ;;  %v1842_v42 = vpack.c.bf16 %v1534_v44, %v1533_v24  ;;  %v3443_v24 = vld [vmem:[#allocation25_spill] sm:$0xff] }
 0x21a   :  { %1910 = vst [vmem:[#allocation6 + $0x10] sm:$0xff] %v1842_v42  }
 0x220   :  { %v2086_v13 = vpop.f32.mrf.mxu1 }
 0x221   :  { %v1539_v25 = vmul.f32 %v2086_v13, %v3433_v10  ;;  %v3444_v13 = vld [vmem:[#allocation35_spill] sm:$0xff] }
 0x222   :  { %v1434_v28 = vpop.f32.mrf.mxu1 }
 0x223   :  { %v1537_v0 = vmul.f32 %v1434_v28, %v3435_v62  ;;  %v3447_v62 = vld [vmem:[#allocation33_spill] sm:$0xff] }
 0x224   :  { %v2087_v63 = vpop.f32.mrf.mxu1 }
 0x225   :  { %v1540_v47 = vmul.f32 %v2087_v63, %v3434_v52  ;;  %v3445_v63 = vld [vmem:[#allocation37_spill] sm:$0xff]  ;;  %v3446_v52 = vld [vmem:[#allocation30_spill] sm:$0xff] }
 0x226   :  { %v1437_v4 = vpop.f32.mrf.mxu1 }
 0x227   :  { %v1857_v49 = vpack.c.bf16 %v1540_v47, %v1539_v25  ;;  %v1538_v8 = vmul.f32 %v1437_v4, %v3436_v27 }
 0x229   :  { %1913 = vst [vmem:[#allocation6 + $0x28] sm:$0xff] %v1857_v49   ;;  %v1852_v7 = vpack.c.bf16 %v1538_v8, %v1537_v0 }
 0x22b   :  { %1912 = vst [vmem:[#allocation6 + $0x20] sm:$0xff] %v1852_v7  }
 0x232   :  { %v2090_v38 = vpop.f32.mrf.mxu1 }
 0x233   :  { %v1543_v36 = vmul.f32 %v2090_v38, %v2588_v55 }
 0x234   :  { %v1450_v22 = vpop.f32.mrf.mxu1 }
 0x235   :  { %v1541_v33 = vmul.f32 %v1450_v22, %v3437_v19 }
 0x236   :  { %v2091_v46 = vpop.f32.mrf.mxu1 }
 0x237   :  { %v1544_v41 = vmul.f32 %v2091_v46, %v2590_v56 }
 0x238   :  { %v1453_v54 = vpop.f32.mrf.mxu1 }
 0x239   :  { %v1867_v53 = vpack.c.bf16 %v1544_v41, %v1543_v36  ;;  %v1542_v3 = vmul.f32 %v1453_v54, %v3438_v21 }
 0x23a   :  { %v2094_v9 = vpop.f32.mrf.mxu1 }
 0x23b   :  { %1915 = vst [vmem:[#allocation6 + $0x38] sm:$0xff] %v1867_v53   ;;  %v1862_v11 = vpack.c.bf16 %v1542_v3, %v1541_v33  ;;  %v1547_v30 = vmul.f32 %v2094_v9, %v2596_v59 }
 0x23c   :  { %v1466_v32 = vpop.f32.mrf.mxu1 }
 0x23d   :  { %1914 = vst [vmem:[#allocation6 + $0x30] sm:$0xff] %v1862_v11   ;;  %v1545_v55 = vmul.f32 %v1466_v32, %v2592_v57 }
 0x23e   :  { %v2095_v29 = vpop.f32.mrf.mxu1 }
 0x23f   :  { %v1548_v15 = vmul.f32 %v2095_v29, %v2598_v60 }
 0x240   :  { %v1469_v40 = vpop.f32.mrf.mxu1 }
 0x241   :  { %v1877_v56 = vpack.c.bf16 %v1548_v15, %v1547_v30  ;;  %v1546_v45 = vmul.f32 %v1469_v40, %v2594_v58 }
 0x243   :  { %1917 = vst [vmem:[#allocation6 + $0x48] sm:$0xff] %v1877_v56   ;;  %v1872_v2 = vpack.c.bf16 %v1546_v45, %v1545_v55 }
 0x245   :  { %v2098_v20 = vpop.f32.mrf.mxu1  ;;  %1916 = vst [vmem:[#allocation6 + $0x40] sm:$0xff] %v1872_v2  }
 0x246   :  { %v1551_v14 = vmul.f32 %v2098_v20, %v2604_v1  ;;  %v3442_v1 = vld [vmem:[#allocation24_spill] sm:$0xff] }
 0x247   :  { %v1482_v26 = vpop.f32.mrf.mxu1 }
 0x248   :  { %v1549_v59 = vmul.f32 %v1482_v26, %v2600_v61 }
 0x249   :  { %v2099_v35 = vpop.f32.mrf.mxu1 }
 0x24a   :  { %v1552_v34 = vmul.f32 %v2099_v35, %v2606_v5 }
 0x24b   :  { %v1485_v18 = vpop.f32.mrf.mxu1 }
 0x24c   :  { %v1887_v60 = vpack.c.bf16 %v1552_v34, %v1551_v14  ;;  %v1550_v17 = vmul.f32 %v1485_v18, %v3439_v6 }
 0x24e   :  { %1919 = vst [vmem:[#allocation6 + $0x58] sm:$0xff] %v1887_v60   ;;  %v1882_v57 = vpack.c.bf16 %v1550_v17, %v1549_v59 }
 0x250   :  { %1918 = vst [vmem:[#allocation6 + $0x50] sm:$0xff] %v1882_v57   ;;  %v2102_v58 = vpop.f32.mrf.mxu1 }
 0x251   :  { %v1555_v23 = vmul.f32 %v2102_v58, %v3440_v12 }
 0x252   :  { %v1498_v48 = vpop.f32.mrf.mxu1 }
 0x253   :  { %v1553_v43 = vmul.f32 %v1498_v48, %v3442_v1 }
 0x254   :  { %v2103_v51 = vpop.f32.mrf.mxu1 }
 0x255   :  { %v1556_v39 = vmul.f32 %v2103_v51, %v3441_v31 }
 0x256   :  { %v1501_v50 = vpop.f32.mrf.mxu1 }
 0x257   :  { %v1897_v5 = vpack.c.bf16 %v1556_v39, %v1555_v23  ;;  %v1554_v16 = vmul.f32 %v1501_v50, %v3443_v24 }
 0x259   :  { %1921 = vst [vmem:[#allocation6 + $0x68] sm:$0xff] %v1897_v5   ;;  %v1892_v61 = vpack.c.bf16 %v1554_v16, %v1553_v43  ;;  %v2106_v37 = vpop.f32.mrf.mxu1 }
 0x25a   :  { %v1559_v28 = vmul.f32 %v2106_v37, %v3444_v13 }
 0x25b   :  { %1920 = vst [vmem:[#allocation6 + $0x60] sm:$0xff] %v1892_v61   ;;  %v1514_v44 = vpop.f32.mrf.mxu1 }
 0x25c   :  { %v1557_v47 = vmul.f32 %v1514_v44, %v3446_v52 }
 0x25d   :  { %v2107_v42 = vpop.f32.mrf.mxu1 }
 0x25e   :  { %v1560_v10 = vmul.f32 %v2107_v42, %v3445_v63 }
 0x25f   :  { %v1517_v25 = vpop.f32.mrf.mxu1 }
 0x260   :  { %v1907_v4 = vpack.c.bf16 %v1560_v10, %v1559_v28  ;;  %v1558_v0 = vmul.f32 %v1517_v25, %v3447_v62 }
 0x262   :  { %1923 = vst [vmem:[#allocation6 + $0x78] sm:$0xff] %v1907_v4   ;;  %v1902_v49 = vpack.c.bf16 %v1558_v0, %v1557_v47 }
 0x264   :  { %1922 = vst [vmem:[#allocation6 + $0x70] sm:$0xff] %v1902_v49  }
 0x265   :  { %2314 = shalt.err (!%p2311_p9)
}
 0x266   :  { %1732 = dma.vmem_to_hbm [thread:$0]  %s1727_s29, 2048, %s3277_s5, [#allocation5], %s2328_s21, %s2328_s21, %s2329_s22  }
 0x267   :  { %2325 = dma.done.wait [#allocation5], 2048  }
 0x268   :  { %2326 = vsyncadd [#allocation5], 4294965248 }
 0x269   :  { %1736 = vsyncpa [#allocation4], 1 }
 0x26a   :  { %1737 = vsyncpa [#allocation5], 1 }

</bundles_post_ra>
